<compile_context>
chip_gen: v6e
topology: v6e:2x2x1
jax: 0.10.0
libtpu: 0.0.40
codegen_flags: <defaults>
</compile_context>

<pallas_src>
import jax
import jax.numpy as jnp
from jax.experimental import pallas as pl
from jax.experimental.pallas import tpu as pltpu

EPS = 1e-5
NEG_SLOPE = 0.2
K = 4   # kernel size
S = 2   # stride
P = 1   # padding

# Flip to jnp.bfloat16 for >=2x MXU throughput on v6e/v7x (f32 accumulation kept).
MXU_DTYPE = jnp.float32


def _vmem_limit_bytes():
    """Generation-dependent VMEM budget: ~75% of physical (96 MiB on v5e/v6e,
    48 MiB on v7x). Falls back to a conservative 48 MiB if the query fails."""
    cap = 64 * 1024 * 1024
    try:
        cap = int(pltpu.get_tpu_info().vmem_capacity_bytes)
    except Exception:
        pass
    return max(32 << 20, (cap * 3) // 4)


def _pick_row_block(H, W, Cin, C4p, mxu_bytes, budget_bytes):
    """Largest TH dividing H (with TH*W % 8 == 0 unless TH == H) whose per-step
    working set (double-buffered blocks + im2col scratch) fits `budget_bytes`."""
    def est(th):
        m = th * W
        xp_b = (H + 2) * (W + 2) * Cin * 4 * 2      # padded image, double-buffered
        w_b = 9 * Cin * C4p * mxu_bytes * 2          # weights (constant block)
        y_b = m * C4p * 4 * 2                        # conv output row-block
        st_b = 2 * C4p * 4 * 2                       # stats
        a_b = m * 9 * Cin * mxu_bytes                # im2col scratch
        return xp_b + w_b + y_b + st_b + a_b
    cands = [th for th in range(H, 0, -1)
             if H % th == 0 and (th == H or (th * W) % 8 == 0)]
    for th in cands:
        if est(th) <= budget_bytes:
            return th
    # TODO(synk): if even the smallest row-block overflows (huge padded input),
    # the xp block itself needs row-blocking with a 2-row halo via manual DMA.
    return cands[-1]


def _upconv_stats_kernel(xp_ref, w_ref, y_ref, stats_ref, a_ref):
    # xp_ref   : (1, H+2, W+2, Cin)   1-padded input image (NHWC, f32)
    # w_ref    : (9*Cin, C4p)         9-tap weights, phase-packed columns (zeros pad)
    # y_ref    : (1, TH*W, C4p)       conv output row-block, phase-packed lanes
    # stats_ref: (1, 1, 2, C4p)       per (image, row-block) lane [sum, sum_sq]
    # a_ref    : (TH, W, 9*Cin) VMEM  dedup'd im2col scratch (MXU_DTYPE)
    _, Hp, Wp, Cin = xp_ref.shape
    W = Wp - 2
    TH = a_ref.shape[0]
    M = TH * W
    r0 = pl.program_id(1) * TH          # first input row of this row-block

    # Build the dedup'd 9-tap im2col: tap t = 3u+v is the input shifted by (u, v),
    # u, v in {0, 1, 2}.  Patches are stored un-reshaped (3-D scratch).
    for u in range(3):
        for v in range(3):
            t = 3 * u + v
            patch = xp_ref[0, pl.ds(r0 + u, TH), v:v + W, :]
            a_ref[:, :, t * Cin:(t + 1) * Cin] = patch.astype(a_ref.dtype)

    a = a_ref[...].reshape(M, a_ref.shape[2])        # layout-preserving when W%8==0
    y = jnp.dot(a, w_ref[...], preferred_element_type=jnp.float32)   # (M, C4p)
    y_ref[0] = y                                      # single unmasked wide store
    stats_ref[0, 0, 0:1, :] = jnp.sum(y, axis=0, keepdims=True)
    stats_ref[0, 0, 1:2, :] = jnp.sum(y * y, axis=0, keepdims=True)


def dcgan_upconv(x_nchw, w_ct, bias, gamma, beta, *, row_block=None):
    """x_nchw: (N, Cin, H, W); w_ct: (Cin, Cout, 4, 4) PyTorch ConvTranspose2d weight.

    `bias` is accepted for parameter parity but is an exact no-op here: train-mode
    BatchNorm subtracts the per-channel batch mean, which cancels any per-channel
    constant added by the conv.
    """
    del bias
    N, Cin, H, W = x_nchw.shape
    Cout = w_ct.shape[1]
    HW = H * W
    Ho, Wo = S * H, S * W
    C4 = 4 * Cout
    C4p = ((C4 + 127) // 128) * 128                  # lane-dense, unmasked stores
    mxu_bytes = jnp.dtype(MXU_DTYPE).itemsize
    vmem_limit = _vmem_limit_bytes()

    # NCHW -> NHWC + 1-pixel zero pad (replaces zero-dilation + pad-by-2).
    x = jnp.transpose(x_nchw, (0, 2, 3, 1)).astype(jnp.float32)
    xp = jnp.pad(x, ((0, 0), (1, 1), (1, 1), (0, 0)))

    # 9-tap phase-packed weight (9*Cin, C4p).  Tap t = 3u+v holds, for output
    # phase (ph, pw), W[:, :, 3+ph-2u, 3+pw-2v] iff u-ph in {0,1} and v-pw in {0,1},
    # else zeros -- this makes the single matmul equal the 4-phase sum exactly.
    w = w_ct.astype(jnp.float32)
    tap_rows = []
    for u in range(3):
        for v in range(3):
            cols = []
            for ph in range(2):
                for pw in range(2):
                    if 0 <= u - ph <= 1 and 0 <= v - pw <= 1:
                        cols.append(w[:, :, 3 + ph - 2 * u, 3 + pw - 2 * v])
                    else:
                        cols.append(jnp.zeros((Cin, Cout), jnp.float32))
            tap_rows.append(jnp.concatenate(cols, axis=1))       # (Cin, 4*Cout)
    w_big = jnp.concatenate(tap_rows, axis=0)                    # (9*Cin, 4*Cout)
    w_big = jnp.pad(w_big, ((0, 0), (0, C4p - C4))).astype(MXU_DTYPE)

    if row_block is None:
        TH = _pick_row_block(H, W, Cin, C4p, mxu_bytes, vmem_limit // 2)
    else:
        TH = int(row_block)
        assert H % TH == 0 and (TH == H or (TH * W) % 8 == 0), (H, W, TH)
    R = H // TH

    # ---- pass 1: transposed conv (9-tap im2col, one matmul) + channel stats ----
    y4, stats = pl.pallas_call(
        _upconv_stats_kernel,
        out_shape=(jax.ShapeDtypeStruct((N, HW, C4p), jnp.float32),
                   jax.ShapeDtypeStruct((N, R, 2, C4p), jnp.float32)),
        grid_spec=pltpu.PrefetchScalarGridSpec(
            num_scalar_prefetch=0,
            grid=(N, R),
            in_specs=[
                # whole padded image stays VMEM-resident across its row-blocks
                # (constant block index along r => fetched once per image).
                pl.BlockSpec((1, H + 2, W + 2, Cin), lambda n, r: (n, 0, 0, 0)),
                # constant weight block.  TODO(synk): single-buffer it via
                # pipeline_mode=pl.Buffered(1) for VMEM-tight v7x deep layers.
                pl.BlockSpec((9 * Cin, C4p), lambda n, r: (0, 0)),
            ],
            out_specs=(pl.BlockSpec((1, TH * W, C4p), lambda n, r: (n, r, 0)),
                       pl.BlockSpec((1, 1, 2, C4p), lambda n, r: (n, r, 0, 0))),
            scratch_shapes=[pltpu.VMEM((TH, W, 9 * Cin), MXU_DTYPE)]),
        compiler_params=pltpu.CompilerParams(
            dimension_semantics=("parallel", "parallel"),
            vmem_limit_bytes=vmem_limit),
    )(xp, w_big)

    # ---- BN fold: tiny O(Cout) XLA reduction over (image, row-block, phase) ----
    s = jnp.sum(stats, axis=(0, 1))[:, :C4].reshape(2, 4, Cout).sum(axis=1)
    count = jnp.float32(N * Ho * Wo)
    mean = s[0] / count
    var = jnp.maximum(s[1] / count - mean * mean, 0.0)
    # TODO(synk): E[x^2]-mean^2 in f32 can lose precision for very large-mean
    # activations; a compensated / two-pass E[(x-mean)^2] form would be exact.
    inv = jax.lax.rsqrt(var + EPS)
    scale = gamma.astype(jnp.float32) * inv
    shift = beta.astype(jnp.float32) - mean * scale

    # ---- tail: scale/shift + LeakyReLU + phase unpack, fused by XLA into the
    # final transpose (conv output read once, result written once; the previous
    # separate Pallas BN pass added a full extra HBM round trip). ----
    scale4 = jnp.tile(scale, 4)
    shift4 = jnp.tile(shift, 4)
    y = y4[:, :, :C4] * scale4 + shift4
    y = jnp.where(y >= 0.0, y, NEG_SLOPE * y)
    out = y.reshape(N, H, W, 2, 2, Cout)              # (n, r, c, ph, pw, co)
    out = jnp.transpose(out, (0, 5, 1, 3, 2, 4)).reshape(N, Cout, Ho, Wo)
    return out


def _reference(x_nchw, w_ct, bias, gamma, beta):
    # pure-JAX reference (includes the conv bias -> also validates its cancellation)
    w_conv = jnp.transpose(jnp.flip(w_ct, (2, 3)), (1, 0, 2, 3))  # (Cout,Cin,K,K)
    y = jax.lax.conv_general_dilated(
        x_nchw.astype(jnp.float32), w_conv.astype(jnp.float32),
        window_strides=(1, 1),
        padding=[(K - 1 - P, K - 1 - P)] * 2,
        lhs_dilation=(S, S),
        dimension_numbers=("NCHW", "OIHW", "NCHW"))
    y = y + bias[None, :, None, None]
    mean = jnp.mean(y, axis=(0, 2, 3), keepdims=True)
    var = jnp.var(y, axis=(0, 2, 3), keepdims=True)
    y = (y - mean) / jnp.sqrt(var + EPS)
    y = y * gamma[None, :, None, None] + beta[None, :, None, None]
    return jnp.where(y >= 0.0, y, NEG_SLOPE * y)


if __name__ == "__main__":
    key = jax.random.PRNGKey(0)
    k1, k2, k3, k4, k5 = jax.random.split(key, 5)

    N, Cin, Cout, H, W = 2, 4, 8, 16, 16
    x = jax.random.normal(k1, (N, Cin, H, W), jnp.float32)
    # ConvTranspose2d(Cin, Cout, 4, 2, 1): weight (Cin, Cout, 4, 4), bias (Cout,)
    w_ct = 0.1 * jax.random.normal(k2, (Cin, Cout, K, K), jnp.float32)
    bias = 0.1 * jax.random.normal(k3, (Cout,), jnp.float32)
    gamma = 1.0 + 0.1 * jax.random.normal(k4, (Cout,), jnp.float32)
    beta = 0.1 * jax.random.normal(k5, (Cout,), jnp.float32)

    ref = _reference(x, w_ct, bias, gamma, beta)

    # Run with the auto-chosen row block (single block here) and with a forced
    # 2-way row split, to exercise both the R == 1 and R > 1 grid paths.
    for rb in (None, 8):
        out = jax.block_until_ready(
            dcgan_upconv(x, w_ct, bias, gamma, beta, row_block=rb))
        assert out.shape == (N, Cout, S * H, S * W), out.shape
        max_err = float(jnp.max(jnp.abs(out - ref)))
        assert jnp.allclose(out, ref, rtol=2e-3, atol=2e-3), (rb, max_err)

    print("KERNEL_OK")
</pallas_src>

<mosaic_0001>
module attributes {stable_mosaic.version = 11 : i64} {
  func.func @_upconv_stats_kernel(%arg0: i32, %arg1: i32, %arg2: memref<1x18x18x4xf32, #tpu.memory_space<vmem>>, %arg3: memref<36x128xf32, #tpu.memory_space<vmem>>, %arg4: memref<1x256x128xf32, #tpu.memory_space<vmem>>, %arg5: memref<1x1x2x128xf32, #tpu.memory_space<vmem>>, %arg6: memref<16x16x36xf32, #tpu.memory_space<vmem>>) attributes {dimension_semantics = [#tpu.dimension_semantics<parallel>, #tpu.dimension_semantics<parallel>], iteration_bounds = array<i64: 2, 1>, scalar_prefetch = 0 : i64, scratch_operands = 1 : i64, tpu.core_type = #tpu.core_type<tc>, window_params = [{transform_indices = @transform_0, window_bounds = array<i64: 1, 18, 18, 4>}, {pipeline_mode = #tpu.pipeline_mode<synchronous>, transform_indices = @transform_1, window_bounds = array<i64: 36, 128>}, {transform_indices = @transform_2, window_bounds = array<i64: 1, 256, 128>}, {transform_indices = @transform_3, window_bounds = array<i64: 1, 1, 2, 128>}]} {
    %c16_i32 = arith.constant 16 : i32
    %0 = arith.muli %arg1, %c16_i32 : i32
    %c0_i32 = arith.constant 0 : i32
    %1 = arith.addi %0, %c0_i32 : i32
    %c0 = arith.constant 0 : index
    %2 = arith.index_cast %1 : i32 to index
    %c0_0 = arith.constant 0 : index
    %c0_1 = arith.constant 0 : index
    %3 = vector.load %arg2[%c0, %2, %c0_0, %c0_1] : memref<1x18x18x4xf32, #tpu.memory_space<vmem>>, vector<1x16x16x4xf32>
    %4 = vector.shape_cast %3 : vector<1x16x16x4xf32> to vector<16x16x4xf32>
    %c0_2 = arith.constant 0 : index
    %c0_3 = arith.constant 0 : index
    %c0_4 = arith.constant 0 : index
    %5 = vector.load %arg6[%c0_2, %c0_3, %c0_4] : memref<16x16x36xf32, #tpu.memory_space<vmem>>, vector<16x16x4xf32>
    tpu.vector_store %arg6[%c0_2, %c0_3, %c0_4], %4 {strides = array<i32>} : memref<16x16x36xf32, #tpu.memory_space<vmem>>, vector<16x16x4xf32>,
    %c0_i32_5 = arith.constant 0 : i32
    %6 = arith.addi %0, %c0_i32_5 : i32
    %c0_6 = arith.constant 0 : index
    %7 = arith.index_cast %6 : i32 to index
    %c1 = arith.constant 1 : index
    %c0_7 = arith.constant 0 : index
    %8 = vector.load %arg2[%c0_6, %7, %c1, %c0_7] : memref<1x18x18x4xf32, #tpu.memory_space<vmem>>, vector<1x16x16x4xf32>
    %9 = vector.shape_cast %8 : vector<1x16x16x4xf32> to vector<16x16x4xf32>
    %c0_8 = arith.constant 0 : index
    %c0_9 = arith.constant 0 : index
    %c4 = arith.constant 4 : index
    %10 = vector.load %arg6[%c0_8, %c0_9, %c4] : memref<16x16x36xf32, #tpu.memory_space<vmem>>, vector<16x16x4xf32>
    tpu.vector_store %arg6[%c0_8, %c0_9, %c4], %9 {strides = array<i32>} : memref<16x16x36xf32, #tpu.memory_space<vmem>>, vector<16x16x4xf32>,
    %c0_i32_10 = arith.constant 0 : i32
    %11 = arith.addi %0, %c0_i32_10 : i32
    %c0_11 = arith.constant 0 : index
    %12 = arith.index_cast %11 : i32 to index
    %c2 = arith.constant 2 : index
    %c0_12 = arith.constant 0 : index
    %13 = vector.load %arg2[%c0_11, %12, %c2, %c0_12] : memref<1x18x18x4xf32, #tpu.memory_space<vmem>>, vector<1x16x16x4xf32>
    %14 = vector.shape_cast %13 : vector<1x16x16x4xf32> to vector<16x16x4xf32>
    %c0_13 = arith.constant 0 : index
    %c0_14 = arith.constant 0 : index
    %c8 = arith.constant 8 : index
    %15 = vector.load %arg6[%c0_13, %c0_14, %c8] : memref<16x16x36xf32, #tpu.memory_space<vmem>>, vector<16x16x4xf32>
    tpu.vector_store %arg6[%c0_13, %c0_14, %c8], %14 {strides = array<i32>} : memref<16x16x36xf32, #tpu.memory_space<vmem>>, vector<16x16x4xf32>,
    %c1_i32 = arith.constant 1 : i32
    %16 = arith.addi %0, %c1_i32 : i32
    %c0_15 = arith.constant 0 : index
    %17 = arith.index_cast %16 : i32 to index
    %c0_16 = arith.constant 0 : index
    %c0_17 = arith.constant 0 : index
    %18 = vector.load %arg2[%c0_15, %17, %c0_16, %c0_17] : memref<1x18x18x4xf32, #tpu.memory_space<vmem>>, vector<1x16x16x4xf32>
    %19 = vector.shape_cast %18 : vector<1x16x16x4xf32> to vector<16x16x4xf32>
    %c0_18 = arith.constant 0 : index
    %c0_19 = arith.constant 0 : index
    %c12 = arith.constant 12 : index
    %20 = vector.load %arg6[%c0_18, %c0_19, %c12] : memref<16x16x36xf32, #tpu.memory_space<vmem>>, vector<16x16x4xf32>
    tpu.vector_store %arg6[%c0_18, %c0_19, %c12], %19 {strides = array<i32>} : memref<16x16x36xf32, #tpu.memory_space<vmem>>, vector<16x16x4xf32>,
    %c1_i32_20 = arith.constant 1 : i32
    %21 = arith.addi %0, %c1_i32_20 : i32
    %c0_21 = arith.constant 0 : index
    %22 = arith.index_cast %21 : i32 to index
    %c1_22 = arith.constant 1 : index
    %c0_23 = arith.constant 0 : index
    %23 = vector.load %arg2[%c0_21, %22, %c1_22, %c0_23] : memref<1x18x18x4xf32, #tpu.memory_space<vmem>>, vector<1x16x16x4xf32>
    %24 = vector.shape_cast %23 : vector<1x16x16x4xf32> to vector<16x16x4xf32>
    %c0_24 = arith.constant 0 : index
    %c0_25 = arith.constant 0 : index
    %c16 = arith.constant 16 : index
    %25 = vector.load %arg6[%c0_24, %c0_25, %c16] : memref<16x16x36xf32, #tpu.memory_space<vmem>>, vector<16x16x4xf32>
    tpu.vector_store %arg6[%c0_24, %c0_25, %c16], %24 {strides = array<i32>} : memref<16x16x36xf32, #tpu.memory_space<vmem>>, vector<16x16x4xf32>,
    %c1_i32_26 = arith.constant 1 : i32
    %26 = arith.addi %0, %c1_i32_26 : i32
    %c0_27 = arith.constant 0 : index
    %27 = arith.index_cast %26 : i32 to index
    %c2_28 = arith.constant 2 : index
    %c0_29 = arith.constant 0 : index
    %28 = vector.load %arg2[%c0_27, %27, %c2_28, %c0_29] : memref<1x18x18x4xf32, #tpu.memory_space<vmem>>, vector<1x16x16x4xf32>
    %29 = vector.shape_cast %28 : vector<1x16x16x4xf32> to vector<16x16x4xf32>
    %c0_30 = arith.constant 0 : index
    %c0_31 = arith.constant 0 : index
    %c20 = arith.constant 20 : index
    %30 = vector.load %arg6[%c0_30, %c0_31, %c20] : memref<16x16x36xf32, #tpu.memory_space<vmem>>, vector<16x16x4xf32>
    tpu.vector_store %arg6[%c0_30, %c0_31, %c20], %29 {strides = array<i32>} : memref<16x16x36xf32, #tpu.memory_space<vmem>>, vector<16x16x4xf32>,
    %c2_i32 = arith.constant 2 : i32
    %31 = arith.addi %0, %c2_i32 : i32
    %c0_32 = arith.constant 0 : index
    %32 = arith.index_cast %31 : i32 to index
    %c0_33 = arith.constant 0 : index
    %c0_34 = arith.constant 0 : index
    %33 = vector.load %arg2[%c0_32, %32, %c0_33, %c0_34] : memref<1x18x18x4xf32, #tpu.memory_space<vmem>>, vector<1x16x16x4xf32>
    %34 = vector.shape_cast %33 : vector<1x16x16x4xf32> to vector<16x16x4xf32>
    %c0_35 = arith.constant 0 : index
    %c0_36 = arith.constant 0 : index
    %c24 = arith.constant 24 : index
    %35 = vector.load %arg6[%c0_35, %c0_36, %c24] : memref<16x16x36xf32, #tpu.memory_space<vmem>>, vector<16x16x4xf32>
    tpu.vector_store %arg6[%c0_35, %c0_36, %c24], %34 {strides = array<i32>} : memref<16x16x36xf32, #tpu.memory_space<vmem>>, vector<16x16x4xf32>,
    %c2_i32_37 = arith.constant 2 : i32
    %36 = arith.addi %0, %c2_i32_37 : i32
    %c0_38 = arith.constant 0 : index
    %37 = arith.index_cast %36 : i32 to index
    %c1_39 = arith.constant 1 : index
    %c0_40 = arith.constant 0 : index
    %38 = vector.load %arg2[%c0_38, %37, %c1_39, %c0_40] : memref<1x18x18x4xf32, #tpu.memory_space<vmem>>, vector<1x16x16x4xf32>
    %39 = vector.shape_cast %38 : vector<1x16x16x4xf32> to vector<16x16x4xf32>
    %c0_41 = arith.constant 0 : index
    %c0_42 = arith.constant 0 : index
    %c28 = arith.constant 28 : index
    %40 = vector.load %arg6[%c0_41, %c0_42, %c28] : memref<16x16x36xf32, #tpu.memory_space<vmem>>, vector<16x16x4xf32>
    tpu.vector_store %arg6[%c0_41, %c0_42, %c28], %39 {strides = array<i32>} : memref<16x16x36xf32, #tpu.memory_space<vmem>>, vector<16x16x4xf32>,
    %c2_i32_43 = arith.constant 2 : i32
    %41 = arith.addi %0, %c2_i32_43 : i32
    %c0_44 = arith.constant 0 : index
    %42 = arith.index_cast %41 : i32 to index
    %c2_45 = arith.constant 2 : index
    %c0_46 = arith.constant 0 : index
    %43 = vector.load %arg2[%c0_44, %42, %c2_45, %c0_46] : memref<1x18x18x4xf32, #tpu.memory_space<vmem>>, vector<1x16x16x4xf32>
    %44 = vector.shape_cast %43 : vector<1x16x16x4xf32> to vector<16x16x4xf32>
    %c0_47 = arith.constant 0 : index
    %c0_48 = arith.constant 0 : index
    %c32 = arith.constant 32 : index
    %45 = vector.load %arg6[%c0_47, %c0_48, %c32] : memref<16x16x36xf32, #tpu.memory_space<vmem>>, vector<16x16x4xf32>
    tpu.vector_store %arg6[%c0_47, %c0_48, %c32], %44 {strides = array<i32>} : memref<16x16x36xf32, #tpu.memory_space<vmem>>, vector<16x16x4xf32>,
    %c0_49 = arith.constant 0 : index
    %c0_50 = arith.constant 0 : index
    %c0_51 = arith.constant 0 : index
    %46 = vector.load %arg6[%c0_49, %c0_50, %c0_51] : memref<16x16x36xf32, #tpu.memory_space<vmem>>, vector<16x16x36xf32>
    %47 = vector.shape_cast %46 : vector<16x16x36xf32> to vector<256x36xf32>
    %c0_52 = arith.constant 0 : index
    %c0_53 = arith.constant 0 : index
    %48 = vector.load %arg3[%c0_52, %c0_53] : memref<36x128xf32, #tpu.memory_space<vmem>>, vector<36x128xf32>
    %cst = arith.constant dense<0.000000e+00> : vector<256x128xf32>
    %49 = tpu.matmul %47, %48, %cst {dimension_numbers = #tpu.dot_dimension_numbers<[1], [0], [0], [1], [0, 0, 1, 1], [], []>} : vector<256x36xf32>, vector<36x128xf32>, vector<256x128xf32> -> vector<256x128xf32>
    %c0_54 = arith.constant 0 : index
    %c0_55 = arith.constant 0 : index
    %c0_56 = arith.constant 0 : index
    %50 = vector.load %arg4[%c0_54, %c0_55, %c0_56] : memref<1x256x128xf32, #tpu.memory_space<vmem>>, vector<1x256x128xf32>
    %51 = vector.shape_cast %50 : vector<1x256x128xf32> to vector<256x128xf32>
    %52 = vector.shape_cast %49 : vector<256x128xf32> to vector<1x256x128xf32>
    tpu.vector_store %arg4[%c0_54, %c0_55, %c0_56], %52 {strides = array<i32>} : memref<1x256x128xf32, #tpu.memory_space<vmem>>, vector<1x256x128xf32>,
    %cst_57 = arith.constant dense<0.000000e+00> : vector<128xf32>
    %53 = vector.multi_reduction <add>, %49, %cst_57 [0] : vector<256x128xf32> to vector<128xf32>
    %54 = vector.shape_cast %53 : vector<128xf32> to vector<1x128xf32>
    %c0_58 = arith.constant 0 : index
    %c0_59 = arith.constant 0 : index
    %c0_60 = arith.constant 0 : index
    %c0_61 = arith.constant 0 : index
    %55 = vector.load %arg5[%c0_58, %c0_59, %c0_60, %c0_61] : memref<1x1x2x128xf32, #tpu.memory_space<vmem>>, vector<1x1x1x128xf32>
    %56 = vector.shape_cast %55 : vector<1x1x1x128xf32> to vector<1x128xf32>
    %57 = vector.shape_cast %54 : vector<1x128xf32> to vector<1x1x1x128xf32>
    tpu.vector_store %arg5[%c0_58, %c0_59, %c0_60, %c0_61], %57 {strides = array<i32>} : memref<1x1x2x128xf32, #tpu.memory_space<vmem>>, vector<1x1x1x128xf32>,
    %58 = arith.mulf %49, %49 : vector<256x128xf32>
    %cst_62 = arith.constant dense<0.000000e+00> : vector<128xf32>
    %59 = vector.multi_reduction <add>, %58, %cst_62 [0] : vector<256x128xf32> to vector<128xf32>
    %60 = vector.shape_cast %59 : vector<128xf32> to vector<1x128xf32>
    %c0_63 = arith.constant 0 : index
    %c0_64 = arith.constant 0 : index
    %c1_65 = arith.constant 1 : index
    %c0_66 = arith.constant 0 : index
    %61 = vector.load %arg5[%c0_63, %c0_64, %c1_65, %c0_66] : memref<1x1x2x128xf32, #tpu.memory_space<vmem>>, vector<1x1x1x128xf32>
    %62 = vector.shape_cast %61 : vector<1x1x1x128xf32> to vector<1x128xf32>
    %63 = vector.shape_cast %60 : vector<1x128xf32> to vector<1x1x1x128xf32>
    tpu.vector_store %arg5[%c0_63, %c0_64, %c1_65, %c0_66], %63 {strides = array<i32>} : memref<1x1x2x128xf32, #tpu.memory_space<vmem>>, vector<1x1x1x128xf32>,
    return
  }
  func.func @transform_0(%arg0: i32, %arg1: i32) -> (i32, i32, i32, i32) {
    %c0_i32 = arith.constant 0 : i32
    %c0_i32_0 = arith.constant 0 : i32
    %c0_i32_1 = arith.constant 0 : i32
    %c0_i32_2 = arith.constant 0 : i32
    return %arg0, %c0_i32, %c0_i32_0, %c0_i32_1 : i32, i32, i32, i32
  }
  func.func @transform_1(%arg0: i32, %arg1: i32) -> (i32, i32) {
    %c0_i32 = arith.constant 0 : i32
    %c0_i32_0 = arith.constant 0 : i32
    %c0_i32_1 = arith.constant 0 : i32
    return %c0_i32, %c0_i32_0 : i32, i32
  }
  func.func @transform_2(%arg0: i32, %arg1: i32) -> (i32, i32, i32) {
    %c0_i32 = arith.constant 0 : i32
    %c0_i32_0 = arith.constant 0 : i32
    return %arg0, %arg1, %c0_i32 : i32, i32, i32
  }
  func.func @transform_3(%arg0: i32, %arg1: i32) -> (i32, i32, i32, i32) {
    %c0_i32 = arith.constant 0 : i32
    %c0_i32_0 = arith.constant 0 : i32
    %c0_i32_1 = arith.constant 0 : i32
    return %arg0, %arg1, %c0_i32, %c0_i32_0 : i32, i32, i32, i32
  }
}

</mosaic_0001>

<bundles_post_ra>
// kernel: tpu_custom_call.1
= control target key start
LH: loop header
LB: loop body
LE: loop exit
PB: predicated region body
PF: predicated region fallthrough
CT: control target
= control target key end

     0   :  { %9 = vsyncpa [#allocation4], 0  ;;  %s4196_s0 = inlined_call_operand.vmem [shape: f32[2,18,18,4], index: 0, kind: input, shape index: {}]   ;;  %s4197_s1 = inlined_call_operand.vmem [shape: f32[36,128], index: 1, kind: input, shape index: {}]   ;;  %s4198_s2 = inlined_call_operand.hbm [shape: f32[2,256,128], index: 2, kind: output, shape index: {0}]   ;;  %s4199_s3 = inlined_call_operand.hbm [shape: f32[2,1,2,128], index: 3, kind: output, shape index: {1}]  }
   0x1   :  { %11 = vsyncpa [#allocation4 + $0x1], 0 }
   0x2   :  { %12 = vsyncpa [#allocation6], 0 }
   0x3   :  { %14 = vsyncpa [#allocation6 + $0x1], 0  ;;  %s3024_s12 = smov 0   ;;  %s3026_s13 = smov 0  }
   0x4   :  { %s3028_s14 = smov 0   ;;  %s3030_s15 = smov 0  }
   0x5   :  { %s3032_s16 = smov 0   ;;  %s3034_s17 = smov 0  }
   0x6 LB: > { %s2469_s18 = sadd.s32 4294967295, %s2991_s17   ;;  %s2470_s19 = sadd.s32 4294967294, %s2991_s17   ;;  %s2991_s17 = sphi %s3034_s17, %s20_s17   ;;  %s2987_s16 = sphi %s3032_s16, %s4206_s16   ;;  %s2983_s15 = sphi %s3030_s15, %s4205_s15   ;;  %s2979_s14 = sphi %s3028_s14, %s4204_s14   ;;  %s2975_s13 = sphi %s3026_s13, %s4203_s13   ;;  %s2971_s12 = sphi %s3024_s12, %s4202_s12  }
   0x7   : > { %s32_s20 = sadd.s32 1, %s2987_s16  ;;  %s88_s21 = sadd.s32 1, %s2979_s14 }
   0x8   : > { %p34_p0 = scmp.ge.s32.totalorder %s32_s20, 2  ;;  %p98_p1 = scmp.ne.s32.totalorder %s2979_s14, %s2975_s13 }
   0x9   : > { %p99_p2 = scmp.eq.s32.totalorder %s2469_s18, 1  ;;  %p104_p3 = scmp.ne.s32.totalorder %s2975_s13, %s2971_s12 }
   0xa   : > { %s4208_s20 = smov (%p34_p0, %s32_s20), 0  ;;  %p105_p5 = scmp.eq.s32.totalorder %s2470_s19, 1 }
   0xb   : > { %p3064_p4 = por %p99_p2, %p98_p1  ;;  %s83_s23 = ssub.s32 %s2987_s16, %s4208_s20 }
   0xc   : > { %p2473_p6 = scmp.ge.s32.totalorder %s2991_s17, 1  ;;  %p86_p7 = scmp.eq.s32.totalorder %s83_s23, 0 }
   0xd   : > { %p3071_p8 = por %p105_p5, %p104_p3  ;;  %p162_p9 = scmp.lt.s32.totalorder %s2991_s17, 3 }
   0xe   : > { %s3077_s25 = scalar_select %p86_p7, %s2979_s14, %s88_s21  }
   0xf   : > { %p163_p10 = pnand %p2473_p6, %p162_p9 }
  0x10   : > { %p191_p11 = scmp.lt.s32.totalorder (!%p163_p10), %s2983_s15, 1  ;;  %s2993_s4 = smov (!%p163_p10), 4  }
  0x11   : > { %166 = sbr.rel (%p163_p10) target bundleno = 896 (0x380), region = 28  ;;  %s2994_s5 = smov (!%p163_p10), 8  }
  0x12   : > { %s2995_s6 = smov (!%p163_p10), 12   ;;  %s2996_s7 = smov (!%p163_p10), 16  }
  0x13   : > { %s2997_s8 = smov (!%p163_p10), 20   ;;  %s2998_s9 = smov (!%p163_p10), 24  }
  0x14   : > { %s2999_s21 = smov (!%p163_p10), 28   ;;  %s3000_s29 = smov (!%p163_p10), 32  }
  0x16   : > { %s192_s26 = scalar_select %p191_p11, %s2983_s15, 1  ;;  %vm232_vm0 = vcmask 31744   ;;  %vm425_vm1 = vcmask 64544   ;;  %vm618_vm2 = vcmask 97344   ;;  %vm1949_vm3 = vcmask 1043456  }
  0x17   : > { %vm814_vm4 = vcmask 130144   ;;  %vm1007_vm5 = vcmask 162944   ;;  %vm1200_vm6 = vcmask 195744   ;;  %vm1396_vm7 = vcmask 228544  }
  0x18   : > { %s2815_s27 = smul.u32 432, %s192_s26  ;;  %vm1589_vm8 = vcmask 261344   ;;  %vm1782_vm9 = vcmask 294144   ;;  %vm1852_vm10 = vcmask 293888   ;;  %s3001_s26 = smov [#allocation3]  }
  0x1a   : > { %s3084_s30 = scalar_lea.vmem %s4196_s0, %s2815_s27  ;;  %s2889_s27 = sshll.u32 %s3001_s26, 4  ;;  %s2890_s27 = int_to_ptr.vmem [resolvable:$false] %s2889_s27 }
  0x1b   : > { %v265_v0 = vld [vmem:[%s3084_s30 + $0x1] sm:$0xff]  ;;  %v3088_v1 = vld [vmem:[%s3084_s30 + $0x19] sm:$0xff]  ;;  %v266_v2 = vld [vmem:[%s3084_s30 + $0x9] sm:$0xff]  ;;  %s2891_s28 = scalar_lea.vmem %s2890_s27, 8192 }
  0x1c   : > { %329 = vrot.lane.b32.xlu0 %v265_v0, %s2993_s4  ;;  %333 = vrot.lane.b32.xlu1 %v3088_v1, %s2993_s4  ;;  %v3095_v3 = vld [vmem:[%s3084_s30 + $0x21] sm:$0xff]  ;;  %v3101_v4 = vld [vmem:[%s3084_s30 + $0x31] sm:$0xff] }
  0x1d   : > { %v3104_v5 = vld [vmem:[%s3084_s30 + $0x39] sm:$0xff]  ;;  %v3111_v6 = vld [vmem:[%s3084_s30 + $0x49] sm:$0xff]  ;;  %v3114_v7 = vld [vmem:[%s3084_s30 + $0x51] sm:$0xff] }
  0x1e   : > { %v3121_v8 = vld [vmem:[%s3084_s30 + $0x61] sm:$0xff]  ;;  %v3124_v9 = vld [vmem:[%s3084_s30 + $0x69] sm:$0xff]  ;;  %v3131_v10 = vld [vmem:[%s3084_s30 + $0x79] sm:$0xff] }
  0x1f   : > { %v3134_v11 = vld [vmem:[%s3084_s30 + $0x81] sm:$0xff]  ;;  %v3142_v13 = vld [vmem:[%s3084_s30 + $0x18] sm:$0xff]  ;;  %v3159_v18 = vld [vmem:[%s3084_s30 + $0xa9] sm:$0xff] }
  0x20   : > { %331 = vrot.lane.b32.xlu0 %v266_v2, %s2993_s4  ;;  %335 = vrot.lane.b32.xlu1 %v3095_v3, %s2993_s4  ;;  %v200_v12 = vld [vmem:[%s3084_s30] sm:$0xff]  ;;  %v3145_v14 = vld [vmem:[%s3084_s30 + $0x91] sm:$0xff]  ;;  %235 = vst.msk [vmem:[#allocation2 + $0x10] sm:$0xff] %vm232_vm0, %v3142_v13 }
  0x21   : > { %v3148_v15 = vld [vmem:[%s3084_s30 + $0x99] sm:$0xff]  ;;  %233 = vst.msk [vmem:[#allocation2] sm:$0xff] %vm232_vm0, %v200_v12  ;;  %v201_v16 = vld [vmem:[%s3084_s30 + $0x8] sm:$0xff]  ;;  %v3164_v19 = vld [vmem:[%s3084_s30 + $0x30] sm:$0xff] }
  0x22   : > { %234 = vst.msk [vmem:[#allocation2 + $0x8] sm:$0xff] %vm232_vm0, %v201_v16  ;;  %v3156_v17 = vld [vmem:[%s3084_s30 + $0x20] sm:$0xff]  ;;  %v3167_v20 = vld [vmem:[%s3084_s30 + $0x38] sm:$0xff]  ;;  %237 = vst.msk [vmem:[#allocation2 + $0x20] sm:$0xff] %vm232_vm0, %v3164_v19 }
  0x23   : > { %236 = vst.msk [vmem:[#allocation2 + $0x18] sm:$0xff] %vm232_vm0, %v3156_v17  ;;  %v3174_v21 = vld [vmem:[%s3084_s30 + $0xb1] sm:$0xff]  ;;  %238 = vst.msk [vmem:[#allocation2 + $0x28] sm:$0xff] %vm232_vm0, %v3167_v20  ;;  %v3181_v22 = vld [vmem:[%s3084_s30 + $0x48] sm:$0xff] }
  0x24   : > { %337 = vrot.lane.b32.xlu0 %v3101_v4, %s2993_s4  ;;  %339 = vrot.lane.b32.xlu1 %v3104_v5, %s2993_s4  ;;  %239 = vst.msk [vmem:[#allocation2 + $0x30] sm:$0xff] %vm232_vm0, %v3181_v22  ;;  %v3186_v23 = vld [vmem:[%s3084_s30 + $0x50] sm:$0xff]  ;;  %v3189_v24 = vld [vmem:[%s3084_s30 + $0x60] sm:$0xff] }
  0x25   : > { %v3192_v25 = vld [vmem:[%s3084_s30 + $0x68] sm:$0xff]  ;;  %240 = vst.msk [vmem:[#allocation2 + $0x38] sm:$0xff] %vm232_vm0, %v3186_v23  ;;  %241 = vst.msk [vmem:[#allocation2 + $0x40] sm:$0xff] %vm232_vm0, %v3189_v24  ;;  %v3201_v26 = vld [vmem:[%s3084_s30 + $0x78] sm:$0xff] }
  0x26   : > { %242 = vst.msk [vmem:[#allocation2 + $0x48] sm:$0xff] %vm232_vm0, %v3192_v25  ;;  %v3204_v27 = vld [vmem:[%s3084_s30 + $0x80] sm:$0xff]  ;;  %v3207_v28 = vld [vmem:[%s3084_s30 + $0x90] sm:$0xff]  ;;  %243 = vst.msk [vmem:[#allocation2 + $0x50] sm:$0xff] %vm232_vm0, %v3201_v26 }
  0x27   : > { %v281_v29 = vld [vmem:[%s3084_s30 + $0xc1] sm:$0xff]  ;;  %v282_v30 = vld [vmem:[%s3084_s30 + $0xc9] sm:$0xff]  ;;  %244 = vst.msk [vmem:[#allocation2 + $0x58] sm:$0xff] %vm232_vm0, %v3204_v27  ;;  %245 = vst.msk [vmem:[#allocation2 + $0x60] sm:$0xff] %vm232_vm0, %v3207_v28 }
  0x28   : > { %341 = vrot.lane.b32.xlu0 %v3111_v6, %s2993_s4  ;;  %343 = vrot.lane.b32.xlu1 %v3114_v7, %s2993_s4  ;;  %v3218_v31 = vld [vmem:[%s3084_s30 + $0x98] sm:$0xff]  ;;  %v3221_v32 = vld [vmem:[%s3084_s30 + $0xa8] sm:$0xff] }
  0x29   : > { %v3224_v33 = vld [vmem:[%s3084_s30 + $0xb0] sm:$0xff]  ;;  %246 = vst.msk [vmem:[#allocation2 + $0x68] sm:$0xff] %vm232_vm0, %v3218_v31  ;;  %247 = vst.msk [vmem:[#allocation2 + $0x70] sm:$0xff] %vm232_vm0, %v3221_v32  ;;  %v3237_v34 = vld [vmem:[%s3084_s30 + $0xc0] sm:$0xff] }
  0x2a   : > { %248 = vst.msk [vmem:[#allocation2 + $0x78] sm:$0xff] %vm232_vm0, %v3224_v33  ;;  %v3240_v35 = vld [vmem:[%s3084_s30 + $0xc8] sm:$0xff]  ;;  %249 = vst.msk [vmem:[#allocation2 + $0x80] sm:$0xff] %vm232_vm0, %v3237_v34  ;;  %v3247_v36 = vld [vmem:[%s3084_s30 + $0xd8] sm:$0xff] }
  0x2b   : > { %250 = vst.msk [vmem:[#allocation2 + $0x88] sm:$0xff] %vm232_vm0, %v3240_v35  ;;  %v3250_v37 = vld [vmem:[%s3084_s30 + $0xe0] sm:$0xff]  ;;  %v3253_v38 = vld [vmem:[%s3084_s30 + $0xf0] sm:$0xff]  ;;  %251 = vst.msk [vmem:[#allocation2 + $0x90] sm:$0xff] %vm232_vm0, %v3247_v36 }
  0x2c   : > { %345 = vrot.lane.b32.xlu0 %v3121_v8, %s2993_s4  ;;  %347 = vrot.lane.b32.xlu1 %v3124_v9, %s2993_s4  ;;  %252 = vst.msk [vmem:[#allocation2 + $0x98] sm:$0xff] %vm232_vm0, %v3250_v37  ;;  %253 = vst.msk [vmem:[#allocation2 + $0xa0] sm:$0xff] %vm232_vm0, %v3253_v38  ;;  %v3262_v39 = vld [vmem:[%s3084_s30 + $0xf8] sm:$0xff]  ;;  %v3265_v40 = vld [vmem:[%s3084_s30 + $0x108] sm:$0xff] }
  0x2d   : > { %v3268_v41 = vld [vmem:[%s3084_s30 + $0x110] sm:$0xff]  ;;  %254 = vst.msk [vmem:[#allocation2 + $0xa8] sm:$0xff] %vm232_vm0, %v3262_v39  ;;  %255 = vst.msk [vmem:[#allocation2 + $0xb0] sm:$0xff] %vm232_vm0, %v3265_v40  ;;  %v283_v42 = vld [vmem:[%s3084_s30 + $0xd9] sm:$0xff] }
  0x2e   : > { %256 = vst.msk [vmem:[#allocation2 + $0xb8] sm:$0xff] %vm232_vm0, %v3268_v41  ;;  %v284_v43 = vld [vmem:[%s3084_s30 + $0xe1] sm:$0xff]  ;;  %v285_v46 = vld [vmem:[%s3084_s30 + $0xf1] sm:$0xff]  ;;  %v286_v47 = vld [vmem:[%s3084_s30 + $0xf9] sm:$0xff] }
  0x2f   : > { %v3281_v44 = vld [vmem:[%s3084_s30 + $0x120] sm:$0xff]  ;;  %v3286_v45 = vld [vmem:[%s3084_s30 + $0x128] sm:$0xff]  ;;  %v226_v48 = vld [vmem:[%s3084_s30 + $0x138] sm:$0xff] }
  0x30   : > { %349 = vrot.lane.b32.xlu0 %v3131_v10, %s2993_s4  ;;  %351 = vrot.lane.b32.xlu1 %v3134_v11, %s2993_s4  ;;  %257 = vst.msk [vmem:[#allocation2 + $0xc0] sm:$0xff] %vm232_vm0, %v3281_v44  ;;  %258 = vst.msk [vmem:[#allocation2 + $0xc8] sm:$0xff] %vm232_vm0, %v3286_v45  ;;  %v227_v49 = vld [vmem:[%s3084_s30 + $0x140] sm:$0xff]  ;;  %v287_v50 = vld [vmem:[%s3084_s30 + $0x109] sm:$0xff] }
  0x31   : > { %259 = vst.msk [vmem:[#allocation2 + $0xd0] sm:$0xff] %vm232_vm0, %v226_v48  ;;  %260 = vst.msk [vmem:[#allocation2 + $0xd8] sm:$0xff] %vm232_vm0, %v227_v49  ;;  %v288_v51 = vld [vmem:[%s3084_s30 + $0x111] sm:$0xff]  ;;  %v289_v54 = vld [vmem:[%s3084_s30 + $0x121] sm:$0xff] }
  0x32   : > { %v228_v52 = vld [vmem:[%s3084_s30 + $0x150] sm:$0xff]  ;;  %v229_v53 = vld [vmem:[%s3084_s30 + $0x158] sm:$0xff]  ;;  %v230_v56 = vld [vmem:[%s3084_s30 + $0x168] sm:$0xff] }
  0x33   : > { %261 = vst.msk [vmem:[#allocation2 + $0xe0] sm:$0xff] %vm232_vm0, %v228_v52  ;;  %262 = vst.msk [vmem:[#allocation2 + $0xe8] sm:$0xff] %vm232_vm0, %v229_v53  ;;  %v290_v55 = vld [vmem:[%s3084_s30 + $0x129] sm:$0xff]  ;;  %v291_v58 = vld [vmem:[%s3084_s30 + $0x139] sm:$0xff] }
  0x34   : > { %353 = vrot.lane.b32.xlu0 %v3145_v14, %s2993_s4  ;;  %355 = vrot.lane.b32.xlu1 %v3148_v15, %s2993_s4  ;;  %263 = vst.msk [vmem:[#allocation2 + $0xf0] sm:$0xff] %vm232_vm0, %v230_v56  ;;  %v231_v57 = vld [vmem:[%s3084_s30 + $0x170] sm:$0xff]  ;;  %v292_v59 = vld [vmem:[%s3084_s30 + $0x141] sm:$0xff] }
  0x35   : > { %264 = vst.msk [vmem:[#allocation2 + $0xf8] sm:$0xff] %vm232_vm0, %v231_v57  ;;  %v293_v60 = vld [vmem:[%s3084_s30 + $0x151] sm:$0xff]  ;;  %v294_v61 = vld [vmem:[%s3084_s30 + $0x159] sm:$0xff]  ;;  %v295_v62 = vld [vmem:[%s3084_s30 + $0x169] sm:$0xff] }
  0x36   : > { %v296_v63 = vld [vmem:[%s3084_s30 + $0x171] sm:$0xff]  ;;  %v458_v0 = vld [vmem:[%s3084_s30 + $0x2] sm:$0xff]  ;;  %v3333_v12 = vld [vmem:[%s3084_s30 + $0x1a] sm:$0xff] }
  0x37   : > { %v459_v2 = vld [vmem:[%s3084_s30 + $0xa] sm:$0xff]  ;;  %v3336_v16 = vld [vmem:[%s3084_s30 + $0x22] sm:$0xff]  ;;  %v3373_v48 = vld [vmem:[%s3084_s30 + $0x7a] sm:$0xff] }
  0x38   : > { %357 = vrot.lane.b32.xlu0 %v3159_v18, %s2993_s4  ;;  %359 = vrot.lane.b32.xlu1 %v3174_v21, %s2993_s4  ;;  %v3376_v49 = vld [vmem:[%s3084_s30 + $0x82] sm:$0xff]  ;;  %v3393_v52 = vld [vmem:[%s3084_s30 + $0xaa] sm:$0xff] }
  0x39   : > { %v3396_v53 = vld [vmem:[%s3084_s30 + $0xb2] sm:$0xff]  ;;  %v476_v56 = vld [vmem:[%s3084_s30 + $0xda] sm:$0xff]  ;;  %v477_v57 = vld [vmem:[%s3084_s30 + $0xe2] sm:$0xff] }
  0x3c   : > { %361 = vrot.lane.b32.xlu0 %v281_v29, %s2993_s4  ;;  %363 = vrot.lane.b32.xlu1 %v282_v30, %s2993_s4  ;;  %v3343_v29 = vld [vmem:[%s3084_s30 + $0x32] sm:$0xff]  ;;  %v3346_v30 = vld [vmem:[%s3084_s30 + $0x3a] sm:$0xff] }
  0x40   : > { %365 = vrot.lane.b32.xlu0 %v283_v42, %s2993_s4  ;;  %367 = vrot.lane.b32.xlu1 %v284_v43, %s2993_s4  ;;  %v3353_v42 = vld [vmem:[%s3084_s30 + $0x4a] sm:$0xff]  ;;  %v3356_v43 = vld [vmem:[%s3084_s30 + $0x52] sm:$0xff] }
  0x44   : > { %369 = vrot.lane.b32.xlu0 %v285_v46, %s2993_s4  ;;  %371 = vrot.lane.b32.xlu1 %v286_v47, %s2993_s4  ;;  %v3363_v46 = vld [vmem:[%s3084_s30 + $0x62] sm:$0xff]  ;;  %v3366_v47 = vld [vmem:[%s3084_s30 + $0x6a] sm:$0xff] }
  0x48   : > { %373 = vrot.lane.b32.xlu0 %v287_v50, %s2993_s4  ;;  %375 = vrot.lane.b32.xlu1 %v288_v51, %s2993_s4  ;;  %v3383_v50 = vld [vmem:[%s3084_s30 + $0x92] sm:$0xff]  ;;  %v3386_v51 = vld [vmem:[%s3084_s30 + $0x9a] sm:$0xff] }
  0x4c   : > { %377 = vrot.lane.b32.xlu0 %v289_v54, %s2993_s4  ;;  %379 = vrot.lane.b32.xlu1 %v290_v55, %s2993_s4  ;;  %v3403_v54 = vld [vmem:[%s3084_s30 + $0xc2] sm:$0xff]  ;;  %v3406_v55 = vld [vmem:[%s3084_s30 + $0xca] sm:$0xff] }
  0x50   : > { %381 = vrot.lane.b32.xlu0 %v291_v58, %s2993_s4  ;;  %383 = vrot.lane.b32.xlu1 %v292_v59, %s2993_s4  ;;  %v478_v58 = vld [vmem:[%s3084_s30 + $0xf2] sm:$0xff]  ;;  %v479_v59 = vld [vmem:[%s3084_s30 + $0xfa] sm:$0xff] }
  0x54   : > { %385 = vrot.lane.b32.xlu0 %v293_v60, %s2993_s4  ;;  %387 = vrot.lane.b32.xlu1 %v294_v61, %s2993_s4  ;;  %v480_v60 = vld [vmem:[%s3084_s30 + $0x10a] sm:$0xff]  ;;  %v481_v61 = vld [vmem:[%s3084_s30 + $0x112] sm:$0xff] }
  0x58   : > { %389 = vrot.lane.b32.xlu0 %v295_v62, %s2993_s4  ;;  %391 = vrot.lane.b32.xlu1 %v296_v63, %s2993_s4  ;;  %v482_v62 = vld [vmem:[%s3084_s30 + $0x122] sm:$0xff]  ;;  %v483_v63 = vld [vmem:[%s3084_s30 + $0x12a] sm:$0xff] }
  0x5c   : > { %522 = vrot.lane.b32.xlu0 %v458_v0, %s2994_s5  ;;  %524 = vrot.lane.b32.xlu1 %v459_v2, %s2994_s5  ;;  %v484_v0 = vld [vmem:[%s3084_s30 + $0x13a] sm:$0xff]  ;;  %v485_v2 = vld [vmem:[%s3084_s30 + $0x142] sm:$0xff] }
  0x60   : > { %526 = vrot.lane.b32.xlu0 %v3333_v12, %s2994_s5  ;;  %528 = vrot.lane.b32.xlu1 %v3336_v16, %s2994_s5 }
  0x64   : > { %530 = vrot.lane.b32.xlu0 %v3343_v29, %s2994_s5  ;;  %532 = vrot.lane.b32.xlu1 %v3346_v30, %s2994_s5 }
  0x68   : > { %534 = vrot.lane.b32.xlu0 %v3353_v42, %s2994_s5  ;;  %536 = vrot.lane.b32.xlu1 %v3356_v43, %s2994_s5 }
  0x6c   : > { %538 = vrot.lane.b32.xlu0 %v3363_v46, %s2994_s5  ;;  %540 = vrot.lane.b32.xlu1 %v3366_v47, %s2994_s5 }
  0x70   : > { %542 = vrot.lane.b32.xlu0 %v3373_v48, %s2994_s5  ;;  %544 = vrot.lane.b32.xlu1 %v3376_v49, %s2994_s5 }
  0x74   : > { %546 = vrot.lane.b32.xlu0 %v3383_v50, %s2994_s5  ;;  %548 = vrot.lane.b32.xlu1 %v3386_v51, %s2994_s5 }
  0x78   : > { %550 = vrot.lane.b32.xlu0 %v3393_v52, %s2994_s5  ;;  %552 = vrot.lane.b32.xlu1 %v3396_v53, %s2994_s5 }
  0x7c   : > { %554 = vrot.lane.b32.xlu0 %v3403_v54, %s2994_s5  ;;  %556 = vrot.lane.b32.xlu1 %v3406_v55, %s2994_s5 }
  0x80   : > { %558 = vrot.lane.b32.xlu0 %v476_v56, %s2994_s5  ;;  %560 = vrot.lane.b32.xlu1 %v477_v57, %s2994_s5 }
  0x84   : > { %562 = vrot.lane.b32.xlu0 %v478_v58, %s2994_s5  ;;  %564 = vrot.lane.b32.xlu1 %v479_v59, %s2994_s5  ;;  %v486_v58 = vld [vmem:[%s3084_s30 + $0x152] sm:$0xff]  ;;  %v487_v59 = vld [vmem:[%s3084_s30 + $0x15a] sm:$0xff] }
  0x88   : > { %566 = vrot.lane.b32.xlu0 %v480_v60, %s2994_s5  ;;  %568 = vrot.lane.b32.xlu1 %v481_v61, %s2994_s5 }
  0x8c   : > { %570 = vrot.lane.b32.xlu0 %v482_v62, %s2994_s5  ;;  %572 = vrot.lane.b32.xlu1 %v483_v63, %s2994_s5  ;;  %v488_v62 = vld [vmem:[%s3084_s30 + $0x16a] sm:$0xff]  ;;  %v489_v63 = vld [vmem:[%s3084_s30 + $0x172] sm:$0xff] }
  0x8e   : > { %v330_v56 = vpop.permute.xlu0 %329  ;;  %v334_v57 = vpop.permute.xlu1 %333 }
  0x8f   : > { %426 = vst.msk [vmem:[#allocation2] sm:$0xff] %vm425_vm1, %v330_v56  ;;  %428 = vst.msk [vmem:[#allocation2 + $0x10] sm:$0xff] %vm425_vm1, %v334_v57 }
  0x90   : > { %574 = vrot.lane.b32.xlu0 %v484_v0, %s2994_s5  ;;  %576 = vrot.lane.b32.xlu1 %v485_v2, %s2994_s5 }
  0x92   : > { %v332_v60 = vpop.permute.xlu0 %331  ;;  %v336_v61 = vpop.permute.xlu1 %335 }
  0x93   : > { %427 = vst.msk [vmem:[#allocation2 + $0x8] sm:$0xff] %vm425_vm1, %v332_v60  ;;  %429 = vst.msk [vmem:[#allocation2 + $0x18] sm:$0xff] %vm425_vm1, %v336_v61 }
  0x94   : > { %578 = vrot.lane.b32.xlu0 %v486_v58, %s2994_s5  ;;  %580 = vrot.lane.b32.xlu1 %v487_v59, %s2994_s5 }
  0x96   : > { %v338_v56 = vpop.permute.xlu0 %337  ;;  %v340_v57 = vpop.permute.xlu1 %339 }
  0x97   : > { %430 = vst.msk [vmem:[#allocation2 + $0x20] sm:$0xff] %vm425_vm1, %v338_v56  ;;  %431 = vst.msk [vmem:[#allocation2 + $0x28] sm:$0xff] %vm425_vm1, %v340_v57 }
  0x98   : > { %582 = vrot.lane.b32.xlu0 %v488_v62, %s2994_s5  ;;  %584 = vrot.lane.b32.xlu1 %v489_v63, %s2994_s5 }
  0x9a   : > { %v342_v0 = vpop.permute.xlu0 %341  ;;  %v344_v2 = vpop.permute.xlu1 %343 }
  0x9b   : > { %432 = vst.msk [vmem:[#allocation2 + $0x30] sm:$0xff] %vm425_vm1, %v342_v0  ;;  %433 = vst.msk [vmem:[#allocation2 + $0x38] sm:$0xff] %vm425_vm1, %v344_v2 }
  0x9c   : > { %718 = vrot.lane.b32.xlu0 %v3142_v13, %s2995_s6  ;;  %720 = vrot.lane.b32.xlu1 %v3156_v17, %s2995_s6 }
  0x9e   : > { %v346_v58 = vpop.permute.xlu0 %345  ;;  %v348_v59 = vpop.permute.xlu1 %347 }
  0x9f   : > { %434 = vst.msk [vmem:[#allocation2 + $0x40] sm:$0xff] %vm425_vm1, %v346_v58  ;;  %435 = vst.msk [vmem:[#allocation2 + $0x48] sm:$0xff] %vm425_vm1, %v348_v59 }
  0xa0   : > { %722 = vrot.lane.b32.xlu0 %v3164_v19, %s2995_s6  ;;  %724 = vrot.lane.b32.xlu1 %v3167_v20, %s2995_s6 }
  0xa2   : > { %v350_v60 = vpop.permute.xlu0 %349  ;;  %v352_v61 = vpop.permute.xlu1 %351 }
  0xa3   : > { %436 = vst.msk [vmem:[#allocation2 + $0x50] sm:$0xff] %vm425_vm1, %v350_v60  ;;  %437 = vst.msk [vmem:[#allocation2 + $0x58] sm:$0xff] %vm425_vm1, %v352_v61 }
  0xa4   : > { %726 = vrot.lane.b32.xlu0 %v3181_v22, %s2995_s6  ;;  %728 = vrot.lane.b32.xlu1 %v3186_v23, %s2995_s6 }
  0xa6   : > { %v354_v13 = vpop.permute.xlu0 %353  ;;  %v356_v17 = vpop.permute.xlu1 %355 }
  0xa7   : > { %438 = vst.msk [vmem:[#allocation2 + $0x60] sm:$0xff] %vm425_vm1, %v354_v13  ;;  %439 = vst.msk [vmem:[#allocation2 + $0x68] sm:$0xff] %vm425_vm1, %v356_v17 }
  0xa8   : > { %730 = vrot.lane.b32.xlu0 %v3189_v24, %s2995_s6  ;;  %732 = vrot.lane.b32.xlu1 %v3192_v25, %s2995_s6 }
  0xaa   : > { %v358_v62 = vpop.permute.xlu0 %357  ;;  %v360_v63 = vpop.permute.xlu1 %359 }
  0xab   : > { %440 = vst.msk [vmem:[#allocation2 + $0x70] sm:$0xff] %vm425_vm1, %v358_v62  ;;  %441 = vst.msk [vmem:[#allocation2 + $0x78] sm:$0xff] %vm425_vm1, %v360_v63 }
  0xac   : > { %734 = vrot.lane.b32.xlu0 %v3201_v26, %s2995_s6  ;;  %736 = vrot.lane.b32.xlu1 %v3204_v27, %s2995_s6 }
  0xae   : > { %v362_v56 = vpop.permute.xlu0 %361  ;;  %v364_v57 = vpop.permute.xlu1 %363 }
  0xaf   : > { %442 = vst.msk [vmem:[#allocation2 + $0x80] sm:$0xff] %vm425_vm1, %v362_v56  ;;  %443 = vst.msk [vmem:[#allocation2 + $0x88] sm:$0xff] %vm425_vm1, %v364_v57 }
  0xb0   : > { %738 = vrot.lane.b32.xlu0 %v3207_v28, %s2995_s6  ;;  %740 = vrot.lane.b32.xlu1 %v3218_v31, %s2995_s6 }
  0xb2   : > { %v366_v0 = vpop.permute.xlu0 %365  ;;  %v368_v2 = vpop.permute.xlu1 %367 }
  0xb3   : > { %444 = vst.msk [vmem:[#allocation2 + $0x90] sm:$0xff] %vm425_vm1, %v366_v0  ;;  %445 = vst.msk [vmem:[#allocation2 + $0x98] sm:$0xff] %vm425_vm1, %v368_v2 }
  0xb4   : > { %742 = vrot.lane.b32.xlu0 %v3221_v32, %s2995_s6  ;;  %744 = vrot.lane.b32.xlu1 %v3224_v33, %s2995_s6 }
  0xb6   : > { %v370_v58 = vpop.permute.xlu0 %369  ;;  %v372_v59 = vpop.permute.xlu1 %371 }
  0xb7   : > { %446 = vst.msk [vmem:[#allocation2 + $0xa0] sm:$0xff] %vm425_vm1, %v370_v58  ;;  %447 = vst.msk [vmem:[#allocation2 + $0xa8] sm:$0xff] %vm425_vm1, %v372_v59  ;;  %v1848_v59 = vld [vmem:[%s4197_s1 + $0x8] sm:$0xff] }
  0xb8   : > { %746 = vrot.lane.b32.xlu0 %v3237_v34, %s2995_s6  ;;  %748 = vrot.lane.b32.xlu1 %v3240_v35, %s2995_s6 }
  0xba   : > { %v374_v60 = vpop.permute.xlu0 %373  ;;  %v376_v61 = vpop.permute.xlu1 %375 }
  0xbb   : > { %448 = vst.msk [vmem:[#allocation2 + $0xb0] sm:$0xff] %vm425_vm1, %v374_v60  ;;  %449 = vst.msk [vmem:[#allocation2 + $0xb8] sm:$0xff] %vm425_vm1, %v376_v61 }
  0xbc   : > { %750 = vrot.lane.b32.xlu0 %v3247_v36, %s2995_s6  ;;  %752 = vrot.lane.b32.xlu1 %v3250_v37, %s2995_s6 }
  0xbe   : > { %v378_v13 = vpop.permute.xlu0 %377  ;;  %v380_v17 = vpop.permute.xlu1 %379 }
  0xbf   : > { %450 = vst.msk [vmem:[#allocation2 + $0xc0] sm:$0xff] %vm425_vm1, %v378_v13  ;;  %451 = vst.msk [vmem:[#allocation2 + $0xc8] sm:$0xff] %vm425_vm1, %v380_v17 }
  0xc0   : > { %754 = vrot.lane.b32.xlu0 %v3253_v38, %s2995_s6  ;;  %756 = vrot.lane.b32.xlu1 %v3262_v39, %s2995_s6 }
  0xc2   : > { %v382_v62 = vpop.permute.xlu0 %381  ;;  %v384_v63 = vpop.permute.xlu1 %383 }
  0xc3   : > { %452 = vst.msk [vmem:[#allocation2 + $0xd0] sm:$0xff] %vm425_vm1, %v382_v62  ;;  %453 = vst.msk [vmem:[#allocation2 + $0xd8] sm:$0xff] %vm425_vm1, %v384_v63 }
  0xc4   : > { %911 = vrot.lane.b32.xlu0 %v3088_v1, %s2996_s7  ;;  %913 = vrot.lane.b32.xlu1 %v3095_v3, %s2996_s7  ;;  %v1851_v1 = vld [vmem:[%s4197_s1 + $0x20] sm:$0xf] }
  0xc5   : > { %2747 = vmatprep.subr.msk.mxu0 %vm1949_vm3, %v1851_v1  ;;  %2805 = vmatprep.subr.msk.mxu1 %vm1949_vm3, %v1851_v1 }
  0xc6   : > { %v386_v56 = vpop.permute.xlu0 %385  ;;  %v388_v57 = vpop.permute.xlu1 %387  ;;  %2748 = vmatpush3.msk.msra.mxu0 %vm1949_vm3, %v1851_v1  ;;  %2810 = vmatpush3.msk.msra.mxu1 %vm1949_vm3, %v1851_v1 }
  0xc7   : > { %454 = vst.msk [vmem:[#allocation2 + $0xe0] sm:$0xff] %vm425_vm1, %v386_v56  ;;  %455 = vst.msk [vmem:[#allocation2 + $0xe8] sm:$0xff] %vm425_vm1, %v388_v57 }
  0xc8   : > { %1104 = vrot.lane.b32.xlu0 %v3333_v12, %s2997_s8  ;;  %1106 = vrot.lane.b32.xlu1 %v3336_v16, %s2997_s8  ;;  %v1850_v16 = vld [vmem:[%s4197_s1 + $0x18] sm:$0xff] }
  0xc9   : > { %2749 = vmatprep.subr.mxu0 %v1850_v16  ;;  %2806 = vmatprep.subr.mxu1 %v1850_v16 }
  0xca   : > { %v390_v0 = vpop.permute.xlu0 %389  ;;  %v392_v2 = vpop.permute.xlu1 %391  ;;  %2750 = vmatpush3.msra.mxu0 %v1850_v16  ;;  %2811 = vmatpush3.msra.mxu1 %v1850_v16 }
  0xcb   : > { %456 = vst.msk [vmem:[#allocation2 + $0xf0] sm:$0xff] %vm425_vm1, %v390_v0  ;;  %457 = vst.msk [vmem:[#allocation2 + $0xf8] sm:$0xff] %vm425_vm1, %v392_v2 }
  0xcc   : > { %1300 = vrot.lane.b32.xlu0 %v3164_v19, %s2998_s9  ;;  %1302 = vrot.lane.b32.xlu1 %v3167_v20, %s2998_s9  ;;  %v1849_v19 = vld [vmem:[%s4197_s1 + $0x10] sm:$0xff] }
  0xcd   : > { %2751 = vmatprep.subr.mxu0 %v1849_v19  ;;  %2807 = vmatprep.subr.mxu1 %v1849_v19 }
  0xce   : > { %v523_v3 = vpop.permute.xlu0 %522  ;;  %v525_v12 = vpop.permute.xlu1 %524  ;;  %2752 = vmatpush3.msra.mxu0 %v1849_v19  ;;  %2812 = vmatpush3.msra.mxu1 %v1849_v19 }
  0xcf   : > { %619 = vst.msk [vmem:[#allocation2] sm:$0xff] %vm618_vm2, %v523_v3  ;;  %620 = vst.msk [vmem:[#allocation2 + $0x8] sm:$0xff] %vm618_vm2, %v525_v12  ;;  %2753 = vmatprep.subr.mxu0 %v1848_v59  ;;  %2808 = vmatprep.subr.mxu1 %v1848_v59 }
  0xd0   : > { %1493 = vrot.lane.b32.xlu0 %v3101_v4, %s2999_s21  ;;  %915 = vrot.lane.b32.xlu1 %v3101_v4, %s2996_s7  ;;  %v1847_v4 = vld [vmem:[%s4197_s1] sm:$0xff] }
  0xd1   : > { %2754 = vmatpush3.msra.mxu0 %v1848_v59  ;;  %2813 = vmatpush3.msra.mxu1 %v1848_v59 }
  0xd2   : > { %v527_v20 = vpop.permute.xlu0 %526  ;;  %v529_v58 = vpop.permute.xlu1 %528  ;;  %2755 = vmatprep.subr.mxu0 %v1847_v4  ;;  %2809 = vmatprep.subr.mxu1 %v1847_v4 }
  0xd3   : > { %621 = vst.msk [vmem:[#allocation2 + $0x10] sm:$0xff] %vm618_vm2, %v527_v20  ;;  %622 = vst.msk [vmem:[#allocation2 + $0x18] sm:$0xff] %vm618_vm2, %v529_v58  ;;  %2756 = vmatpush3.msra.mxu0 %v1847_v4  ;;  %2814 = vmatpush3.msra.mxu1 %v1847_v4 }
  0xd4   : > { %1495 = vrot.lane.b32.xlu0 %v3104_v5, %s2999_s21  ;;  %1686 = vrot.lane.b32.xlu1 %v3343_v29, %s3000_s29 }
  0xd6   : > { %v531_v60 = vpop.permute.xlu0 %530  ;;  %v533_v61 = vpop.permute.xlu1 %532 }
  0xd7   : > { %623 = vst.msk [vmem:[#allocation2 + $0x20] sm:$0xff] %vm618_vm2, %v531_v60  ;;  %624 = vst.msk [vmem:[#allocation2 + $0x28] sm:$0xff] %vm618_vm2, %v533_v61 }
  0xd8   : > { %917 = vrot.lane.b32.xlu0 %v3104_v5, %s2996_s7  ;;  %1108 = vrot.lane.b32.xlu1 %v3343_v29, %s2997_s8 }
  0xda   : > { %v535_v13 = vpop.permute.xlu0 %534  ;;  %v537_v17 = vpop.permute.xlu1 %536 }
  0xdb   : > { %625 = vst.msk [vmem:[#allocation2 + $0x30] sm:$0xff] %vm618_vm2, %v535_v13  ;;  %626 = vst.msk [vmem:[#allocation2 + $0x38] sm:$0xff] %vm618_vm2, %v537_v17 }
  0xdc   : > { %1688 = vrot.lane.b32.xlu0 %v3346_v30, %s3000_s29  ;;  %1110 = vrot.lane.b32.xlu1 %v3346_v30, %s2997_s8 }
  0xde   : > { %v539_v62 = vpop.permute.xlu0 %538  ;;  %v541_v63 = vpop.permute.xlu1 %540 }
  0xdf   : > { %627 = vst.msk [vmem:[#allocation2 + $0x40] sm:$0xff] %vm618_vm2, %v539_v62  ;;  %628 = vst.msk [vmem:[#allocation2 + $0x48] sm:$0xff] %vm618_vm2, %v541_v63 }
  0xe0   : > { %1304 = vrot.lane.b32.xlu0 %v3181_v22, %s2998_s9  ;;  %1306 = vrot.lane.b32.xlu1 %v3186_v23, %s2998_s9 }
  0xe2   : > { %v543_v5 = vpop.permute.xlu0 %542  ;;  %v545_v29 = vpop.permute.xlu1 %544 }
  0xe3   : > { %629 = vst.msk [vmem:[#allocation2 + $0x50] sm:$0xff] %vm618_vm2, %v543_v5  ;;  %630 = vst.msk [vmem:[#allocation2 + $0x58] sm:$0xff] %vm618_vm2, %v545_v29 }
  0xe4   : > { %1497 = vrot.lane.b32.xlu0 %v3111_v6, %s2999_s21  ;;  %919 = vrot.lane.b32.xlu1 %v3111_v6, %s2996_s7 }
  0xe6   : > { %v547_v30 = vpop.permute.xlu0 %546  ;;  %v549_v56 = vpop.permute.xlu1 %548 }
  0xe7   : > { %631 = vst.msk [vmem:[#allocation2 + $0x60] sm:$0xff] %vm618_vm2, %v547_v30  ;;  %632 = vst.msk [vmem:[#allocation2 + $0x68] sm:$0xff] %vm618_vm2, %v549_v56 }
  0xe8   : > { %1499 = vrot.lane.b32.xlu0 %v3114_v7, %s2999_s21  ;;  %1690 = vrot.lane.b32.xlu1 %v3353_v42, %s3000_s29 }
  0xea   : > { %v551_v22 = vpop.permute.xlu0 %550  ;;  %v553_v23 = vpop.permute.xlu1 %552 }
  0xeb   : > { %633 = vst.msk [vmem:[#allocation2 + $0x70] sm:$0xff] %vm618_vm2, %v551_v22  ;;  %634 = vst.msk [vmem:[#allocation2 + $0x78] sm:$0xff] %vm618_vm2, %v553_v23  ;;  %v2556_v23 = vld [vmem:[%s3084_s30 + $0xca] sm:$0xff] }
  0xec   : > { %921 = vrot.lane.b32.xlu0 %v3114_v7, %s2996_s7  ;;  %1112 = vrot.lane.b32.xlu1 %v3353_v42, %s2997_s8 }
  0xee   : > { %v555_v6 = vpop.permute.xlu0 %554  ;;  %v557_v57 = vpop.permute.xlu1 %556 }
  0xef   : > { %635 = vst.msk [vmem:[#allocation2 + $0x80] sm:$0xff] %vm618_vm2, %v555_v6  ;;  %636 = vst.msk [vmem:[#allocation2 + $0x88] sm:$0xff] %vm618_vm2, %v557_v57 }
  0xf0   : > { %1692 = vrot.lane.b32.xlu0 %v3356_v43, %s3000_s29  ;;  %1114 = vrot.lane.b32.xlu1 %v3356_v43, %s2997_s8 }
  0xf2   : > { %v559_v0 = vpop.permute.xlu0 %558  ;;  %v561_v2 = vpop.permute.xlu1 %560 }
  0xf3   : > { %637 = vst.msk [vmem:[#allocation2 + $0x90] sm:$0xff] %vm618_vm2, %v559_v0  ;;  %638 = vst.msk [vmem:[#allocation2 + $0x98] sm:$0xff] %vm618_vm2, %v561_v2 }
  0xf4   : > { %1308 = vrot.lane.b32.xlu0 %v3189_v24, %s2998_s9  ;;  %1310 = vrot.lane.b32.xlu1 %v3192_v25, %s2998_s9 }
  0xf6   : > { %v563_v7 = vpop.permute.xlu0 %562  ;;  %v565_v42 = vpop.permute.xlu1 %564 }
  0xf7   : > { %639 = vst.msk [vmem:[#allocation2 + $0xa0] sm:$0xff] %vm618_vm2, %v563_v7  ;;  %640 = vst.msk [vmem:[#allocation2 + $0xa8] sm:$0xff] %vm618_vm2, %v565_v42 }
  0xf8   : > { %1501 = vrot.lane.b32.xlu0 %v3121_v8, %s2999_s21  ;;  %923 = vrot.lane.b32.xlu1 %v3121_v8, %s2996_s7 }
  0xfa   : > { %v567_v43 = vpop.permute.xlu0 %566  ;;  %v569_v1 = vpop.permute.xlu1 %568 }
  0xfb   : > { %641 = vst.msk [vmem:[#allocation2 + $0xb0] sm:$0xff] %vm618_vm2, %v567_v43  ;;  %642 = vst.msk [vmem:[#allocation2 + $0xb8] sm:$0xff] %vm618_vm2, %v569_v1  ;;  %v2620_v43 = vld [vmem:[%s3084_s30 + $0xe1] sm:$0xff] }
  0xfc   : > { %1503 = vrot.lane.b32.xlu0 %v3124_v9, %s2999_s21  ;;  %1694 = vrot.lane.b32.xlu1 %v3363_v46, %s3000_s29  ;;  %v2651_v1 = vld [vmem:[%s3084_s30 + $0xda] sm:$0xff] }
  0xfe   : > { %v571_v24 = vpop.permute.xlu0 %570  ;;  %v573_v25 = vpop.permute.xlu1 %572 }
  0xff   : > { %643 = vst.msk [vmem:[#allocation2 + $0xc0] sm:$0xff] %vm618_vm2, %v571_v24  ;;  %644 = vst.msk [vmem:[#allocation2 + $0xc8] sm:$0xff] %vm618_vm2, %v573_v25 }
 0x100   : > { %925 = vrot.lane.b32.xlu0 %v3124_v9, %s2996_s7  ;;  %1116 = vrot.lane.b32.xlu1 %v3363_v46, %s2997_s8 }
 0x102   : > { %v575_v8 = vpop.permute.xlu0 %574  ;;  %v577_v3 = vpop.permute.xlu1 %576 }
 0x103   : > { %645 = vst.msk [vmem:[#allocation2 + $0xd0] sm:$0xff] %vm618_vm2, %v575_v8  ;;  %646 = vst.msk [vmem:[#allocation2 + $0xd8] sm:$0xff] %vm618_vm2, %v577_v3  ;;  %v2652_v3 = vld [vmem:[%s3084_s30 + $0xe2] sm:$0xff] }
 0x104   : > { %1696 = vrot.lane.b32.xlu0 %v3366_v47, %s3000_s29  ;;  %1118 = vrot.lane.b32.xlu1 %v3366_v47, %s2997_s8 }
 0x106   : > { %v579_v12 = vpop.permute.xlu0 %578  ;;  %v581_v16 = vpop.permute.xlu1 %580 }
 0x107   : > { %647 = vst.msk [vmem:[#allocation2 + $0xe0] sm:$0xff] %vm618_vm2, %v579_v12  ;;  %648 = vst.msk [vmem:[#allocation2 + $0xe8] sm:$0xff] %vm618_vm2, %v581_v16 }
 0x108   : > { %1312 = vrot.lane.b32.xlu0 %v3201_v26, %s2998_s9  ;;  %1314 = vrot.lane.b32.xlu1 %v3204_v27, %s2998_s9 }
 0x10a   : > { %v583_v9 = vpop.permute.xlu0 %582  ;;  %v585_v46 = vpop.permute.xlu1 %584 }
 0x10b   : > { %649 = vst.msk [vmem:[#allocation2 + $0xf0] sm:$0xff] %vm618_vm2, %v583_v9  ;;  %650 = vst.msk [vmem:[#allocation2 + $0xf8] sm:$0xff] %vm618_vm2, %v585_v46 }
 0x10c   : > { %1505 = vrot.lane.b32.xlu0 %v3131_v10, %s2999_s21  ;;  %927 = vrot.lane.b32.xlu1 %v3131_v10, %s2996_s7 }
 0x10e   : > { %v719_v47 = vpop.permute.xlu0 %718  ;;  %v721_v19 = vpop.permute.xlu1 %720 }
 0x10f   : > { %815 = vst.msk [vmem:[#allocation2] sm:$0xff] %vm814_vm4, %v719_v47  ;;  %816 = vst.msk [vmem:[#allocation2 + $0x8] sm:$0xff] %vm814_vm4, %v721_v19  ;;  %v2621_v19 = vld [vmem:[%s3084_s30 + $0xf1] sm:$0xff] }
 0x110   : > { %1507 = vrot.lane.b32.xlu0 %v3134_v11, %s2999_s21  ;;  %1698 = vrot.lane.b32.xlu1 %v3373_v48, %s3000_s29 }
 0x112   : > { %v723_v26 = vpop.permute.xlu0 %722  ;;  %v725_v27 = vpop.permute.xlu1 %724 }
 0x113   : > { %817 = vst.msk [vmem:[#allocation2 + $0x10] sm:$0xff] %vm814_vm4, %v723_v26  ;;  %818 = vst.msk [vmem:[#allocation2 + $0x18] sm:$0xff] %vm814_vm4, %v725_v27 }
 0x114   : > { %929 = vrot.lane.b32.xlu0 %v3134_v11, %s2996_s7  ;;  %1120 = vrot.lane.b32.xlu1 %v3373_v48, %s2997_s8 }
 0x116   : > { %v727_v10 = vpop.permute.xlu0 %726  ;;  %v729_v20 = vpop.permute.xlu1 %728 }
 0x117   : > { %819 = vst.msk [vmem:[#allocation2 + $0x20] sm:$0xff] %vm814_vm4, %v727_v10  ;;  %820 = vst.msk [vmem:[#allocation2 + $0x28] sm:$0xff] %vm814_vm4, %v729_v20  ;;  %v2622_v10 = vld [vmem:[%s3084_s30 + $0xf9] sm:$0xff] }
 0x118   : > { %1700 = vrot.lane.b32.xlu0 %v3376_v49, %s3000_s29  ;;  %1122 = vrot.lane.b32.xlu1 %v3376_v49, %s2997_s8  ;;  %v2653_v20 = vld [vmem:[%s3084_s30 + $0xf2] sm:$0xff] }
 0x11a   : > { %v731_v58 = vpop.permute.xlu0 %730  ;;  %v733_v59 = vpop.permute.xlu1 %732 }
 0x11b   : > { %821 = vst.msk [vmem:[#allocation2 + $0x30] sm:$0xff] %vm814_vm4, %v731_v58  ;;  %822 = vst.msk [vmem:[#allocation2 + $0x38] sm:$0xff] %vm814_vm4, %v733_v59 }
 0x11c   : > { %1316 = vrot.lane.b32.xlu0 %v3207_v28, %s2998_s9  ;;  %1318 = vrot.lane.b32.xlu1 %v3218_v31, %s2998_s9 }
 0x11e   : > { %v735_v11 = vpop.permute.xlu0 %734  ;;  %v737_v48 = vpop.permute.xlu1 %736 }
 0x11f   : > { %823 = vst.msk [vmem:[#allocation2 + $0x40] sm:$0xff] %vm814_vm4, %v735_v11  ;;  %824 = vst.msk [vmem:[#allocation2 + $0x48] sm:$0xff] %vm814_vm4, %v737_v48  ;;  %v2654_v48 = vld [vmem:[%s3084_s30 + $0xfa] sm:$0xff] }
 0x120   : > { %1509 = vrot.lane.b32.xlu0 %v3145_v14, %s2999_s21  ;;  %931 = vrot.lane.b32.xlu1 %v3145_v14, %s2996_s7 }
 0x122   : > { %v739_v49 = vpop.permute.xlu0 %738  ;;  %v741_v4 = vpop.permute.xlu1 %740 }
 0x123   : > { %825 = vst.msk [vmem:[#allocation2 + $0x50] sm:$0xff] %vm814_vm4, %v739_v49  ;;  %826 = vst.msk [vmem:[#allocation2 + $0x58] sm:$0xff] %vm814_vm4, %v741_v4 }
 0x124   : > { %1511 = vrot.lane.b32.xlu0 %v3148_v15, %s2999_s21  ;;  %1702 = vrot.lane.b32.xlu1 %v3383_v50, %s3000_s29 }
 0x126   : > { %v743_v28 = vpop.permute.xlu0 %742  ;;  %v745_v31 = vpop.permute.xlu1 %744 }
 0x127   : > { %827 = vst.msk [vmem:[#allocation2 + $0x60] sm:$0xff] %vm814_vm4, %v743_v28  ;;  %828 = vst.msk [vmem:[#allocation2 + $0x68] sm:$0xff] %vm814_vm4, %v745_v31 }
 0x128   : > { %933 = vrot.lane.b32.xlu0 %v3148_v15, %s2996_s7  ;;  %1124 = vrot.lane.b32.xlu1 %v3383_v50, %s2997_s8 }
 0x12a   : > { %v747_v14 = vpop.permute.xlu0 %746  ;;  %v749_v60 = vpop.permute.xlu1 %748 }
 0x12b   : > { %829 = vst.msk [vmem:[#allocation2 + $0x70] sm:$0xff] %vm814_vm4, %v747_v14  ;;  %830 = vst.msk [vmem:[#allocation2 + $0x78] sm:$0xff] %vm814_vm4, %v749_v60  ;;  %v2623_v60 = vld [vmem:[%s3084_s30 + $0x109] sm:$0xff] }
 0x12c   : > { %1704 = vrot.lane.b32.xlu0 %v3386_v51, %s3000_s29  ;;  %1126 = vrot.lane.b32.xlu1 %v3386_v51, %s2997_s8 }
 0x12e   : > { %v751_v61 = vpop.permute.xlu0 %750  ;;  %v753_v13 = vpop.permute.xlu1 %752 }
 0x12f   : > { %831 = vst.msk [vmem:[#allocation2 + $0x80] sm:$0xff] %vm814_vm4, %v751_v61  ;;  %832 = vst.msk [vmem:[#allocation2 + $0x88] sm:$0xff] %vm814_vm4, %v753_v13 }
 0x130   : > { %1320 = vrot.lane.b32.xlu0 %v3221_v32, %s2998_s9  ;;  %1322 = vrot.lane.b32.xlu1 %v3224_v33, %s2998_s9 }
 0x132   : > { %v755_v15 = vpop.permute.xlu0 %754  ;;  %v757_v50 = vpop.permute.xlu1 %756 }
 0x133   : > { %833 = vst.msk [vmem:[#allocation2 + $0x90] sm:$0xff] %vm814_vm4, %v755_v15  ;;  %834 = vst.msk [vmem:[#allocation2 + $0x98] sm:$0xff] %vm814_vm4, %v757_v50 }
 0x134   : > { %1513 = vrot.lane.b32.xlu0 %v3159_v18, %s2999_s21  ;;  %935 = vrot.lane.b32.xlu1 %v3159_v18, %s2996_s7 }
 0x136   : > { %v912_v51 = vpop.permute.xlu0 %911  ;;  %v914_v17 = vpop.permute.xlu1 %913 }
 0x137   : > { %1008 = vst.msk [vmem:[#allocation2] sm:$0xff] %vm1007_vm5, %v912_v51  ;;  %1009 = vst.msk [vmem:[#allocation2 + $0x8] sm:$0xff] %vm1007_vm5, %v914_v17  ;;  %v2655_v51 = vld [vmem:[%s3084_s30 + $0x10a] sm:$0xff] }
 0x138   : > { %1515 = vrot.lane.b32.xlu0 %v3174_v21, %s2999_s21  ;;  %1706 = vrot.lane.b32.xlu1 %v3393_v52, %s3000_s29 }
 0x13a   : > { %v1105_v32 = vpop.permute.xlu0 %1104  ;;  %v1107_v33 = vpop.permute.xlu1 %1106 }
 0x13b   : > { %1201 = vst.msk [vmem:[#allocation2] sm:$0xff] %vm1200_vm6, %v1105_v32  ;;  %1202 = vst.msk [vmem:[#allocation2 + $0x8] sm:$0xff] %vm1200_vm6, %v1107_v33 }
 0x13c   : > { %937 = vrot.lane.b32.xlu0 %v3174_v21, %s2996_s7  ;;  %1128 = vrot.lane.b32.xlu1 %v3393_v52, %s2997_s8  ;;  %v2617_v52 = vld [vmem:[%s3084_s30 + $0xc1] sm:$0xff] }
 0x13e   : > { %v1301_v18 = vpop.permute.xlu0 %1300  ;;  %v1303_v62 = vpop.permute.xlu1 %1302 }
 0x13f   : > { %1397 = vst.msk [vmem:[#allocation2] sm:$0xff] %vm1396_vm7, %v1301_v18  ;;  %1398 = vst.msk [vmem:[#allocation2 + $0x8] sm:$0xff] %vm1396_vm7, %v1303_v62  ;;  %v2656_v62 = vld [vmem:[%s3084_s30 + $0x112] sm:$0xff] }
 0x140   : > { %1708 = vrot.lane.b32.xlu0 %v3396_v53, %s3000_s29  ;;  %1130 = vrot.lane.b32.xlu1 %v3396_v53, %s2997_s8  ;;  %v2618_v53 = vld [vmem:[%s3084_s30 + $0xc9] sm:$0xff] }
 0x142   : > { %v1494_v21 = vpop.permute.xlu0 %1493  ;;  %v916_v63 = vpop.permute.xlu1 %915 }
 0x143   : > { %1590 = vst.msk [vmem:[#allocation2] sm:$0xff] %vm1589_vm8, %v1494_v21 }
 0x144   : > { %1010 = vst.msk [vmem:[#allocation2 + $0x10] sm:$0xff] %vm1007_vm5, %v916_v63  ;;  %1324 = vrot.lane.b32.xlu0 %v3237_v34, %s2998_s9  ;;  %1326 = vrot.lane.b32.xlu1 %v3240_v35, %s2998_s9 }
 0x146   : > { %v1496_v5 = vpop.permute.xlu0 %1495  ;;  %v1687_v29 = vpop.permute.xlu1 %1686 }
 0x147   : > { %1591 = vst.msk [vmem:[#allocation2 + $0x8] sm:$0xff] %vm1589_vm8, %v1496_v5 }
 0x148   : > { %1783 = vst.msk [vmem:[#allocation2] sm:$0xff] %vm1782_vm9, %v1687_v29  ;;  %1517 = vrot.lane.b32.xlu0 %v2617_v52, %s2999_s21  ;;  %939 = vrot.lane.b32.xlu1 %v2617_v52, %s2996_s7 }
 0x14a   : > { %v918_v30 = vpop.permute.xlu0 %917  ;;  %v1109_v56 = vpop.permute.xlu1 %1108 }
 0x14b   : > { %1011 = vst.msk [vmem:[#allocation2 + $0x18] sm:$0xff] %vm1007_vm5, %v918_v30 }
 0x14c   : > { %1203 = vst.msk [vmem:[#allocation2 + $0x10] sm:$0xff] %vm1200_vm6, %v1109_v56  ;;  %1519 = vrot.lane.b32.xlu0 %v2618_v53, %s2999_s21  ;;  %1710 = vrot.lane.b32.xlu1 %v3403_v54, %s3000_s29 }
 0x14e   : > { %v1689_v34 = vpop.permute.xlu0 %1688  ;;  %v1111_v35 = vpop.permute.xlu1 %1110 }
 0x14f   : > { %v1815_v22 = vld [vmem:[#allocation2] sm:$0xff]  ;;  %1784 = vst.msk [vmem:[#allocation2 + $0x8] sm:$0xff] %vm1782_vm9, %v1689_v34 }
 0x150   : > { %1204 = vst.msk [vmem:[#allocation2 + $0x18] sm:$0xff] %vm1200_vm6, %v1111_v35  ;;  %2757 = vmatprep.mubr.msk.f32.mxu0 %vm1852_vm10, %v1815_v22  ;;  %941 = vrot.lane.b32.xlu0 %v2618_v53, %s2996_s7  ;;  %v2625_v53 = vld [vmem:[%s3084_s30 + $0x121] sm:$0xff] }
 0x151   : > { %1132 = vrot.lane.b32.xlu1 %v3403_v54, %s2997_s8  ;;  %v2619_v54 = vld [vmem:[%s3084_s30 + $0xd9] sm:$0xff] }
 0x152   : > { %v1305_v6 = vpop.permute.xlu0 %1304  ;;  %v1307_v57 = vpop.permute.xlu1 %1306 }
 0x153   : > { %1399 = vst.msk [vmem:[#allocation2 + $0x10] sm:$0xff] %vm1396_vm7, %v1305_v6  ;;  %1400 = vst.msk [vmem:[#allocation2 + $0x18] sm:$0xff] %vm1396_vm7, %v1307_v57 }
 0x154   : > { %1712 = vrot.lane.b32.xlu0 %v3406_v55, %s3000_s29 }
 0x155   : > { %1134 = vrot.lane.b32.xlu1 %v2556_v23, %s2997_s8  ;;  %v2657_v23 = vld [vmem:[%s3084_s30 + $0x122] sm:$0xff] }
 0x156   : > { %v1498_v0 = vpop.permute.xlu0 %1497  ;;  %v920_v2 = vpop.permute.xlu1 %919  ;;  %v1816_v7 = vld [vmem:[#allocation2 + $0x8] sm:$0xff] }
 0x157   : > { %1592 = vst.msk [vmem:[#allocation2 + $0x10] sm:$0xff] %vm1589_vm8, %v1498_v0  ;;  %2758 = vmatmul.mubr.msk.f32.vlgmr.msra.gmra.mxu0 %vm1852_vm10, %v1816_v7 }
 0x158   : > { %1012 = vst.msk [vmem:[#allocation2 + $0x20] sm:$0xff] %vm1007_vm5, %v920_v2  ;;  %1328 = vrot.lane.b32.xlu0 %v3247_v36, %s2998_s9 }
 0x159   : > { %1330 = vrot.lane.b32.xlu1 %v3250_v37, %s2998_s9 }
 0x15a   : > { %v1500_v55 = vpop.permute.xlu0 %1499  ;;  %v1691_v42 = vpop.permute.xlu1 %1690 }
 0x15b   : > { %1593 = vst.msk [vmem:[#allocation2 + $0x18] sm:$0xff] %vm1589_vm8, %v1500_v55 }
 0x15c   : > { %1785 = vst.msk [vmem:[#allocation2 + $0x10] sm:$0xff] %vm1782_vm9, %v1691_v42  ;;  %1521 = vrot.lane.b32.xlu0 %v2619_v54, %s2999_s21  ;;  %v2595_v42 = vld [vmem:[%s3084_s30 + $0x138] sm:$0xff] }
 0x15d   : > { %943 = vrot.lane.b32.xlu1 %v2619_v54, %s2996_s7 }
 0x15e   : > { %v922_v24 = vpop.permute.xlu0 %921  ;;  %v1113_v25 = vpop.permute.xlu1 %1112 }
 0x15f   : > { %1013 = vst.msk [vmem:[#allocation2 + $0x28] sm:$0xff] %vm1007_vm5, %v922_v24  ;;  %v2596_v24 = vld [vmem:[%s3084_s30 + $0x140] sm:$0xff] }
 0x160   : > { %1205 = vst.msk [vmem:[#allocation2 + $0x20] sm:$0xff] %vm1200_vm6, %v1113_v25  ;;  %1523 = vrot.lane.b32.xlu0 %v2620_v43, %s2999_s21  ;;  %v2627_v25 = vld [vmem:[%s3084_s30 + $0x139] sm:$0xff] }
 0x161   : > { %1714 = vrot.lane.b32.xlu1 %v2651_v1, %s3000_s29 }
 0x162   : > { %v1693_v36 = vpop.permute.xlu0 %1692  ;;  %v1115_v37 = vpop.permute.xlu1 %1114 }
 0x163   : > { %v1817_v8 = vld [vmem:[#allocation2 + $0x10] sm:$0xff]  ;;  %1786 = vst.msk [vmem:[#allocation2 + $0x18] sm:$0xff] %vm1782_vm9, %v1693_v36 }
 0x164   : > { %1206 = vst.msk [vmem:[#allocation2 + $0x28] sm:$0xff] %vm1200_vm6, %v1115_v37  ;;  %2760 = vmatprep.mubr.msk.f32.mxu0 %vm1852_vm10, %v1817_v8  ;;  %945 = vrot.lane.b32.xlu0 %v2620_v43, %s2996_s7 }
 0x165   : > { %1136 = vrot.lane.b32.xlu1 %v2651_v1, %s2997_s8 }
 0x166   : > { %v1309_v12 = vpop.permute.xlu0 %1308  ;;  %v1311_v16 = vpop.permute.xlu1 %1310 }
 0x167   : > { %1401 = vst.msk [vmem:[#allocation2 + $0x20] sm:$0xff] %vm1396_vm7, %v1309_v12  ;;  %1402 = vst.msk [vmem:[#allocation2 + $0x28] sm:$0xff] %vm1396_vm7, %v1311_v16  ;;  %v2628_v16 = vld [vmem:[%s3084_s30 + $0x141] sm:$0xff] }
 0x168   : > { %1716 = vrot.lane.b32.xlu0 %v2652_v3, %s3000_s29 }
 0x169   : > { %1138 = vrot.lane.b32.xlu1 %v2652_v3, %s2997_s8 }
 0x16a   : > { %v1502_v9 = vpop.permute.xlu0 %1501  ;;  %v924_v46 = vpop.permute.xlu1 %923  ;;  %v1818_v47 = vld [vmem:[#allocation2 + $0x18] sm:$0xff] }
 0x16b   : > { %1594 = vst.msk [vmem:[#allocation2 + $0x20] sm:$0xff] %vm1589_vm8, %v1502_v9  ;;  %2761 = vmatmul.mubr.msk.f32.gmra.mxu0 %vm1852_vm10, %v1818_v47  ;;  %v2659_v9 = vld [vmem:[%s3084_s30 + $0x13a] sm:$0xff] }
 0x16c   : > { %1014 = vst.msk [vmem:[#allocation2 + $0x30] sm:$0xff] %vm1007_vm5, %v924_v46  ;;  %1332 = vrot.lane.b32.xlu0 %v3253_v38, %s2998_s9 }
 0x16d   : > { %1334 = vrot.lane.b32.xlu1 %v3262_v39, %s2998_s9 }
 0x16e   : > { %v1504_v26 = vpop.permute.xlu0 %1503  ;;  %v1695_v27 = vpop.permute.xlu1 %1694 }
 0x16f   : > { %1595 = vst.msk [vmem:[#allocation2 + $0x28] sm:$0xff] %vm1589_vm8, %v1504_v26 }
 0x170   : > { %1787 = vst.msk [vmem:[#allocation2 + $0x20] sm:$0xff] %vm1782_vm9, %v1695_v27  ;;  %1525 = vrot.lane.b32.xlu0 %v2621_v19, %s2999_s21 }
 0x171   : > { %947 = vrot.lane.b32.xlu1 %v2621_v19, %s2996_s7 }
 0x172   : > { %v926_v58 = vpop.permute.xlu0 %925  ;;  %v1117_v59 = vpop.permute.xlu1 %1116 }
 0x173   : > { %1015 = vst.msk [vmem:[#allocation2 + $0x38] sm:$0xff] %vm1007_vm5, %v926_v58 }
 0x174   : > { %1207 = vst.msk [vmem:[#allocation2 + $0x30] sm:$0xff] %vm1200_vm6, %v1117_v59  ;;  %1527 = vrot.lane.b32.xlu0 %v2622_v10, %s2999_s21  ;;  %v2597_v59 = vld [vmem:[%s3084_s30 + $0x150] sm:$0xff] }
 0x175   : > { %1718 = vrot.lane.b32.xlu1 %v2653_v20, %s3000_s29 }
 0x176   : > { %v1697_v38 = vpop.permute.xlu0 %1696  ;;  %v1119_v39 = vpop.permute.xlu1 %1118 }
 0x177   : > { %v1819_v11 = vld [vmem:[#allocation2 + $0x20] sm:$0xff]  ;;  %1788 = vst.msk [vmem:[#allocation2 + $0x28] sm:$0xff] %vm1782_vm9, %v1697_v38 }
 0x178   : > { %1208 = vst.msk [vmem:[#allocation2 + $0x38] sm:$0xff] %vm1200_vm6, %v1119_v39  ;;  %2763 = vmatprep.mubr.msk.f32.mxu0 %vm1852_vm10, %v1819_v11  ;;  %949 = vrot.lane.b32.xlu0 %v2622_v10, %s2996_s7  ;;  %v2660_v10 = vld [vmem:[%s3084_s30 + $0x142] sm:$0xff] }
 0x179   : > { %1140 = vrot.lane.b32.xlu1 %v2653_v20, %s2997_s8 }
 0x17a   : > { %v1313_v49 = vpop.permute.xlu0 %1312  ;;  %v1315_v4 = vpop.permute.xlu1 %1314 }
 0x17b   : > { %1403 = vst.msk [vmem:[#allocation2 + $0x30] sm:$0xff] %vm1396_vm7, %v1313_v49  ;;  %1404 = vst.msk [vmem:[#allocation2 + $0x38] sm:$0xff] %vm1396_vm7, %v1315_v4  ;;  %v2629_v49 = vld [vmem:[%s3084_s30 + $0x151] sm:$0xff] }
 0x17c   : > { %1720 = vrot.lane.b32.xlu0 %v2654_v48, %s3000_s29 }
 0x17d   : > { %1142 = vrot.lane.b32.xlu1 %v2654_v48, %s2997_s8  ;;  %v2598_v48 = vld [vmem:[%s3084_s30 + $0x158] sm:$0xff] }
 0x17e   : > { %v1506_v28 = vpop.permute.xlu0 %1505  ;;  %v928_v31 = vpop.permute.xlu1 %927  ;;  %v1820_v14 = vld [vmem:[#allocation2 + $0x28] sm:$0xff] }
 0x17f   : > { %1596 = vst.msk [vmem:[#allocation2 + $0x30] sm:$0xff] %vm1589_vm8, %v1506_v28  ;;  %2764 = vmatmul.mubr.msk.f32.gmra.mxu0 %vm1852_vm10, %v1820_v14 }
 0x180   : > { %1016 = vst.msk [vmem:[#allocation2 + $0x40] sm:$0xff] %vm1007_vm5, %v928_v31  ;;  %1336 = vrot.lane.b32.xlu0 %v3265_v40, %s2998_s9 }
 0x181   : > { %758 = vrot.lane.b32.xlu1 %v3265_v40, %s2995_s6  ;;  %v2624_v40 = vld [vmem:[%s3084_s30 + $0x111] sm:$0xff] }
 0x182   : > { %v1508_v61 = vpop.permute.xlu0 %1507  ;;  %v1699_v13 = vpop.permute.xlu1 %1698 }
 0x183   : > { %1597 = vst.msk [vmem:[#allocation2 + $0x38] sm:$0xff] %vm1589_vm8, %v1508_v61  ;;  %v2630_v61 = vld [vmem:[%s3084_s30 + $0x159] sm:$0xff] }
 0x184   : > { %1789 = vst.msk [vmem:[#allocation2 + $0x30] sm:$0xff] %vm1782_vm9, %v1699_v13  ;;  %1338 = vrot.lane.b32.xlu0 %v3268_v41, %s2998_s9  ;;  %v2661_v13 = vld [vmem:[%s3084_s30 + $0x152] sm:$0xff] }
 0x185   : > { %1529 = vrot.lane.b32.xlu1 %v2623_v60, %s2999_s21 }
 0x186   : > { %v930_v15 = vpop.permute.xlu0 %929  ;;  %v1121_v50 = vpop.permute.xlu1 %1120 }
 0x187   : > { %1017 = vst.msk [vmem:[#allocation2 + $0x48] sm:$0xff] %vm1007_vm5, %v930_v15 }
 0x188   : > { %1209 = vst.msk [vmem:[#allocation2 + $0x40] sm:$0xff] %vm1200_vm6, %v1121_v50  ;;  %760 = vrot.lane.b32.xlu0 %v3268_v41, %s2995_s6 }
 0x189   : > { %951 = vrot.lane.b32.xlu1 %v2623_v60, %s2996_s7 }
 0x18a   : > { %v1701_v17 = vpop.permute.xlu0 %1700  ;;  %v1123_v32 = vpop.permute.xlu1 %1122 }
 0x18b   : > { %v1821_v33 = vld [vmem:[#allocation2 + $0x30] sm:$0xff]  ;;  %1790 = vst.msk [vmem:[#allocation2 + $0x38] sm:$0xff] %vm1782_vm9, %v1701_v17  ;;  %v2662_v17 = vld [vmem:[%s3084_s30 + $0x15a] sm:$0xff] }
 0x18c   : > { %1210 = vst.msk [vmem:[#allocation2 + $0x48] sm:$0xff] %vm1200_vm6, %v1123_v32  ;;  %2766 = vmatprep.mubr.msk.f32.mxu0 %vm1852_vm10, %v1821_v33  ;;  %1531 = vrot.lane.b32.xlu0 %v2624_v40, %s2999_s21 }
 0x18d   : > { %1722 = vrot.lane.b32.xlu1 %v2655_v51, %s3000_s29 }
 0x18e   : > { %v1317_v18 = vpop.permute.xlu0 %1316  ;;  %v1319_v41 = vpop.permute.xlu1 %1318 }
 0x18f   : > { %1405 = vst.msk [vmem:[#allocation2 + $0x40] sm:$0xff] %vm1396_vm7, %v1317_v18  ;;  %1406 = vst.msk [vmem:[#allocation2 + $0x48] sm:$0xff] %vm1396_vm7, %v1319_v41  ;;  %v2599_v41 = vld [vmem:[%s3084_s30 + $0x168] sm:$0xff] }
 0x190   : > { %953 = vrot.lane.b32.xlu0 %v2624_v40, %s2996_s7 }
 0x191   : > { %1144 = vrot.lane.b32.xlu1 %v2655_v51, %s2997_s8 }
 0x192   : > { %v1510_v21 = vpop.permute.xlu0 %1509  ;;  %v932_v63 = vpop.permute.xlu1 %931  ;;  %v1822_v52 = vld [vmem:[#allocation2 + $0x38] sm:$0xff] }
 0x193   : > { %1598 = vst.msk [vmem:[#allocation2 + $0x40] sm:$0xff] %vm1589_vm8, %v1510_v21  ;;  %2767 = vmatmul.mubr.msk.f32.gmra.mxu0 %vm1852_vm10, %v1822_v52  ;;  %v2631_v52 = vld [vmem:[%s3084_s30 + $0x169] sm:$0xff] }
 0x194   : > { %1018 = vst.msk [vmem:[#allocation2 + $0x50] sm:$0xff] %vm1007_vm5, %v932_v63  ;;  %1724 = vrot.lane.b32.xlu0 %v2656_v62, %s3000_s29  ;;  %v2600_v63 = vld [vmem:[%s3084_s30 + $0x170] sm:$0xff] }
 0x195   : > { %1146 = vrot.lane.b32.xlu1 %v2656_v62, %s2997_s8 }
 0x196   : > { %v1512_v5 = vpop.permute.xlu0 %1511  ;;  %v1703_v29 = vpop.permute.xlu1 %1702 }
 0x197   : > { %1599 = vst.msk [vmem:[#allocation2 + $0x48] sm:$0xff] %vm1589_vm8, %v1512_v5 }
 0x198   : > { %1791 = vst.msk [vmem:[#allocation2 + $0x40] sm:$0xff] %vm1782_vm9, %v1703_v29  ;;  %1340 = vrot.lane.b32.xlu0 %v3281_v44, %s2998_s9 }
 0x199   : > { %762 = vrot.lane.b32.xlu1 %v3281_v44, %s2995_s6  ;;  %v2626_v44 = vld [vmem:[%s3084_s30 + $0x129] sm:$0xff] }
 0x19a   : > { %v934_v30 = vpop.permute.xlu0 %933  ;;  %v1125_v56 = vpop.permute.xlu1 %1124 }
 0x19b   : > { %1019 = vst.msk [vmem:[#allocation2 + $0x58] sm:$0xff] %vm1007_vm5, %v934_v30 }
 0x19c   : > { %1211 = vst.msk [vmem:[#allocation2 + $0x50] sm:$0xff] %vm1200_vm6, %v1125_v56  ;;  %1342 = vrot.lane.b32.xlu0 %v3286_v45, %s2998_s9 }
 0x19d   : > { %1533 = vrot.lane.b32.xlu1 %v2625_v53, %s2999_s21 }
 0x19e   : > { %v1705_v34 = vpop.permute.xlu0 %1704  ;;  %v1127_v35 = vpop.permute.xlu1 %1126 }
 0x19f   : > { %v1823_v22 = vld [vmem:[#allocation2 + $0x40] sm:$0xff]  ;;  %1792 = vst.msk [vmem:[#allocation2 + $0x48] sm:$0xff] %vm1782_vm9, %v1705_v34  ;;  %v2632_v34 = vld [vmem:[%s3084_s30 + $0x171] sm:$0xff] }
 0x1a0   : > { %1212 = vst.msk [vmem:[#allocation2 + $0x58] sm:$0xff] %vm1200_vm6, %v1127_v35  ;;  %2769 = vmatprep.mubr.msk.f32.mxu0 %vm1852_vm10, %v1823_v22  ;;  %764 = vrot.lane.b32.xlu0 %v3286_v45, %s2995_s6  ;;  %v2658_v45 = vld [vmem:[%s3084_s30 + $0x12a] sm:$0xff] }
 0x1a1   : > { %955 = vrot.lane.b32.xlu1 %v2625_v53, %s2996_s7  ;;  %v2663_v35 = vld [vmem:[%s3084_s30 + $0x16a] sm:$0xff] }
 0x1a2   : > { %v1321_v6 = vpop.permute.xlu0 %1320  ;;  %v1323_v57 = vpop.permute.xlu1 %1322 }
 0x1a3   : > { %1407 = vst.msk [vmem:[#allocation2 + $0x50] sm:$0xff] %vm1396_vm7, %v1321_v6  ;;  %1408 = vst.msk [vmem:[#allocation2 + $0x58] sm:$0xff] %vm1396_vm7, %v1323_v57 }
 0x1a4   : > { %1535 = vrot.lane.b32.xlu0 %v2626_v44, %s2999_s21 }
 0x1a5   : > { %1726 = vrot.lane.b32.xlu1 %v2657_v23, %s3000_s29 }
 0x1a6   : > { %v1514_v0 = vpop.permute.xlu0 %1513  ;;  %v936_v2 = vpop.permute.xlu1 %935  ;;  %v1824_v7 = vld [vmem:[#allocation2 + $0x48] sm:$0xff] }
 0x1a7   : > { %1600 = vst.msk [vmem:[#allocation2 + $0x50] sm:$0xff] %vm1589_vm8, %v1514_v0  ;;  %2770 = vmatmul.mubr.msk.f32.gmra.mxu0 %vm1852_vm10, %v1824_v7  ;;  %v2664_v0 = vld [vmem:[%s3084_s30 + $0x172] sm:$0xff] }
 0x1a8   : > { %1020 = vst.msk [vmem:[#allocation2 + $0x60] sm:$0xff] %vm1007_vm5, %v936_v2  ;;  %957 = vrot.lane.b32.xlu0 %v2626_v44, %s2996_s7 }
 0x1a9   : > { %1148 = vrot.lane.b32.xlu1 %v2657_v23, %s2997_s8 }
 0x1aa   : > { %v1516_v54 = vpop.permute.xlu0 %1515  ;;  %v1707_v55 = vpop.permute.xlu1 %1706 }
 0x1ab   : > { %1601 = vst.msk [vmem:[#allocation2 + $0x58] sm:$0xff] %vm1589_vm8, %v1516_v54 }
 0x1ac   : > { %1793 = vst.msk [vmem:[#allocation2 + $0x50] sm:$0xff] %vm1782_vm9, %v1707_v55  ;;  %1728 = vrot.lane.b32.xlu0 %v2658_v45, %s3000_s29 }
 0x1ad   : > { %1150 = vrot.lane.b32.xlu1 %v2658_v45, %s2997_s8  ;;  %v2601_v45 = vld [vmem:[%s3084_s30 + $0x180] sm:$0xff] }
 0x1ae   : > { %v938_v43 = vpop.permute.xlu0 %937  ;;  %v1129_v1 = vpop.permute.xlu1 %1128 }
 0x1af   : > { %1021 = vst.msk [vmem:[#allocation2 + $0x68] sm:$0xff] %vm1007_vm5, %v938_v43  ;;  %v2602_v43 = vld [vmem:[%s3084_s30 + $0x188] sm:$0xff] }
 0x1b0   : > { %1213 = vst.msk [vmem:[#allocation2 + $0x60] sm:$0xff] %vm1200_vm6, %v1129_v1  ;;  %1344 = vrot.lane.b32.xlu0 %v2595_v42, %s2998_s9  ;;  %v2633_v1 = vld [vmem:[%s3084_s30 + $0x181] sm:$0xff] }
 0x1b1   : > { %766 = vrot.lane.b32.xlu1 %v2595_v42, %s2995_s6 }
 0x1b2   : > { %v1709_v36 = vpop.permute.xlu0 %1708  ;;  %v1131_v37 = vpop.permute.xlu1 %1130 }
 0x1b3   : > { %v1825_v8 = vld [vmem:[#allocation2 + $0x50] sm:$0xff]  ;;  %1794 = vst.msk [vmem:[#allocation2 + $0x58] sm:$0xff] %vm1782_vm9, %v1709_v36 }
 0x1b4   : > { %1214 = vst.msk [vmem:[#allocation2 + $0x68] sm:$0xff] %vm1200_vm6, %v1131_v37  ;;  %2772 = vmatprep.mubr.msk.f32.mxu0 %vm1852_vm10, %v1825_v8  ;;  %1346 = vrot.lane.b32.xlu0 %v2596_v24, %s2998_s9  ;;  %v2634_v8 = vld [vmem:[%s3084_s30 + $0x189] sm:$0xff] }
 0x1b5   : > { %1537 = vrot.lane.b32.xlu1 %v2627_v25, %s2999_s21 }
 0x1b6   : > { %v1325_v3 = vpop.permute.xlu0 %1324  ;;  %v1327_v12 = vpop.permute.xlu1 %1326 }
 0x1b7   : > { %1409 = vst.msk [vmem:[#allocation2 + $0x60] sm:$0xff] %vm1396_vm7, %v1325_v3  ;;  %1410 = vst.msk [vmem:[#allocation2 + $0x68] sm:$0xff] %vm1396_vm7, %v1327_v12  ;;  %v2665_v3 = vld [vmem:[%s3084_s30 + $0x182] sm:$0xff] }
 0x1b8   : > { %768 = vrot.lane.b32.xlu0 %v2596_v24, %s2995_s6 }
 0x1b9   : > { %959 = vrot.lane.b32.xlu1 %v2627_v25, %s2996_s7 }
 0x1ba   : > { %v1518_v46 = vpop.permute.xlu0 %1517  ;;  %v940_v47 = vpop.permute.xlu1 %939  ;;  %v1826_v19 = vld [vmem:[#allocation2 + $0x58] sm:$0xff] }
 0x1bb   : > { %1602 = vst.msk [vmem:[#allocation2 + $0x60] sm:$0xff] %vm1589_vm8, %v1518_v46  ;;  %2773 = vmatmul.mubr.msk.f32.gmra.mxu0 %vm1852_vm10, %v1826_v19  ;;  %v2666_v19 = vld [vmem:[%s3084_s30 + $0x18a] sm:$0xff] }
 0x1bc   : > { %1022 = vst.msk [vmem:[#allocation2 + $0x70] sm:$0xff] %vm1007_vm5, %v940_v47  ;;  %1539 = vrot.lane.b32.xlu0 %v2628_v16, %s2999_s21 }
 0x1bd   : > { %1730 = vrot.lane.b32.xlu1 %v2659_v9, %s3000_s29 }
 0x1be   : > { %v1520_v26 = vpop.permute.xlu0 %1519  ;;  %v1711_v27 = vpop.permute.xlu1 %1710 }
 0x1bf   : > { %1603 = vst.msk [vmem:[#allocation2 + $0x68] sm:$0xff] %vm1589_vm8, %v1520_v26 }
 0x1c0   : > { %1795 = vst.msk [vmem:[#allocation2 + $0x60] sm:$0xff] %vm1782_vm9, %v1711_v27  ;;  %961 = vrot.lane.b32.xlu0 %v2628_v16, %s2996_s7 }
 0x1c1   : > { %1152 = vrot.lane.b32.xlu1 %v2659_v9, %s2997_s8 }
 0x1c2   : > { %v942_v20 = vpop.permute.xlu0 %941 }
 0x1c3   : > { %v1133_v58 = vpop.permute.xlu1 %1132  ;;  %1023 = vst.msk [vmem:[#allocation2 + $0x78] sm:$0xff] %vm1007_vm5, %v942_v20  ;;  %v2604_v20 = vld [vmem:[%s3084_s30 + $0x1a0] sm:$0xff] }
 0x1c4   : > { %1215 = vst.msk [vmem:[#allocation2 + $0x70] sm:$0xff] %vm1200_vm6, %v1133_v58  ;;  %1732 = vrot.lane.b32.xlu0 %v2660_v10, %s3000_s29 }
 0x1c5   : > { %1154 = vrot.lane.b32.xlu1 %v2660_v10, %s2997_s8  ;;  %v2603_v10 = vld [vmem:[%s3084_s30 + $0x198] sm:$0xff] }
 0x1c6   : > { %v1713_v38 = vpop.permute.xlu0 %1712 }
 0x1c7   : > { %v1135_v39 = vpop.permute.xlu1 %1134  ;;  %v1827_v11 = vld [vmem:[#allocation2 + $0x60] sm:$0xff]  ;;  %1796 = vst.msk [vmem:[#allocation2 + $0x68] sm:$0xff] %vm1782_vm9, %v1713_v38 }
 0x1c8   : > { %1216 = vst.msk [vmem:[#allocation2 + $0x78] sm:$0xff] %vm1200_vm6, %v1135_v39  ;;  %2775 = vmatprep.mubr.msk.f32.mxu0 %vm1852_vm10, %v1827_v11  ;;  %1348 = vrot.lane.b32.xlu0 %v2597_v59, %s2998_s9  ;;  %v2635_v39 = vld [vmem:[%s3084_s30 + $0x199] sm:$0xff]  ;;  %v2636_v11 = vld [vmem:[%s3084_s30 + $0x1a1] sm:$0xff] }
 0x1c9   : > { %770 = vrot.lane.b32.xlu1 %v2597_v59, %s2995_s6 }
 0x1ca   : > { %v1329_v4 = vpop.permute.xlu0 %1328 }
 0x1cb   : > { %v1331_v28 = vpop.permute.xlu1 %1330  ;;  %1411 = vst.msk [vmem:[#allocation2 + $0x70] sm:$0xff] %vm1396_vm7, %v1329_v4  ;;  %v2667_v4 = vld [vmem:[%s3084_s30 + $0x19a] sm:$0xff] }
 0x1cc   : > { %1412 = vst.msk [vmem:[#allocation2 + $0x78] sm:$0xff] %vm1396_vm7, %v1331_v28  ;;  %1350 = vrot.lane.b32.xlu0 %v2598_v48, %s2998_s9  ;;  %v2668_v28 = vld [vmem:[%s3084_s30 + $0x1a2] sm:$0xff]  ;;  %s2709_s30 = sshll.u32 %s2983_s15, 12 }
 0x1cd   : > { %1541 = vrot.lane.b32.xlu1 %v2629_v49, %s2999_s21  ;;  %s4126_s19 = scalar_lea.hbm %s4198_s2, %s2709_s30 }
 0x1ce   : > { %v1522_v31 = vpop.permute.xlu0 %1521  ;;  %v1828_v60 = vld [vmem:[#allocation2 + $0x68] sm:$0xff] }
 0x1cf   : > { %v944_v14 = vpop.permute.xlu1 %943  ;;  %1604 = vst.msk [vmem:[#allocation2 + $0x70] sm:$0xff] %vm1589_vm8, %v1522_v31  ;;  %2776 = vmatmul.mubr.msk.f32.gmra.mxu0 %vm1852_vm10, %v1828_v60 }
 0x1d0   : > { %1024 = vst.msk [vmem:[#allocation2 + $0x80] sm:$0xff] %vm1007_vm5, %v944_v14  ;;  %772 = vrot.lane.b32.xlu0 %v2598_v48, %s2995_s6 }
 0x1d1   : > { %963 = vrot.lane.b32.xlu1 %v2629_v49, %s2996_s7 }
 0x1d2   : > { %v1524_v15 = vpop.permute.xlu0 %1523 }
 0x1d3   : > { %v1715_v50 = vpop.permute.xlu1 %1714  ;;  %1605 = vst.msk [vmem:[#allocation2 + $0x78] sm:$0xff] %vm1589_vm8, %v1524_v15 }
 0x1d4   : > { %1797 = vst.msk [vmem:[#allocation2 + $0x70] sm:$0xff] %vm1782_vm9, %v1715_v50  ;;  %1543 = vrot.lane.b32.xlu0 %v2630_v61, %s2999_s21 }
 0x1d5   : > { %1734 = vrot.lane.b32.xlu1 %v2661_v13, %s3000_s29 }
 0x1d6   : > { %v946_v40 = vpop.permute.xlu0 %945 }
 0x1d7   : > { %v1137_v51 = vpop.permute.xlu1 %1136  ;;  %1025 = vst.msk [vmem:[#allocation2 + $0x88] sm:$0xff] %vm1007_vm5, %v946_v40 }
 0x1d8   : > { %1217 = vst.msk [vmem:[#allocation2 + $0x80] sm:$0xff] %vm1200_vm6, %v1137_v51  ;;  %965 = vrot.lane.b32.xlu0 %v2630_v61, %s2996_s7 }
 0x1d9   : > { %1156 = vrot.lane.b32.xlu1 %v2661_v13, %s2997_s8 }
 0x1da   : > { %v1717_v32 = vpop.permute.xlu0 %1716 }
 0x1db   : > { %v1139_v33 = vpop.permute.xlu1 %1138  ;;  %v1829_v18 = vld [vmem:[#allocation2 + $0x70] sm:$0xff]  ;;  %1798 = vst.msk [vmem:[#allocation2 + $0x78] sm:$0xff] %vm1782_vm9, %v1717_v32 }
 0x1dc   : > { %1218 = vst.msk [vmem:[#allocation2 + $0x88] sm:$0xff] %vm1200_vm6, %v1139_v33  ;;  %2778 = vmatprep.mubr.msk.f32.mxu0 %vm1852_vm10, %v1829_v18  ;;  %1736 = vrot.lane.b32.xlu0 %v2662_v17, %s3000_s29 }
 0x1dd   : > { %1158 = vrot.lane.b32.xlu1 %v2662_v17, %s2997_s8 }
 0x1de   : > { %v1333_v62 = vpop.permute.xlu0 %1332 }
 0x1df   : > { %v1335_v21 = vpop.permute.xlu1 %1334  ;;  %1413 = vst.msk [vmem:[#allocation2 + $0x80] sm:$0xff] %vm1396_vm7, %v1333_v62 }
 0x1e0   : > { %1414 = vst.msk [vmem:[#allocation2 + $0x88] sm:$0xff] %vm1396_vm7, %v1335_v21  ;;  %1352 = vrot.lane.b32.xlu0 %v2599_v41, %s2998_s9 }
 0x1e1   : > { %774 = vrot.lane.b32.xlu1 %v2599_v41, %s2995_s6 }
 0x1e2   : > { %v1526_v5 = vpop.permute.xlu0 %1525  ;;  %v1830_v53 = vld [vmem:[#allocation2 + $0x78] sm:$0xff] }
 0x1e3   : > { %v948_v29 = vpop.permute.xlu1 %947  ;;  %1606 = vst.msk [vmem:[#allocation2 + $0x80] sm:$0xff] %vm1589_vm8, %v1526_v5  ;;  %2779 = vmatmul.mubr.msk.f32.gmra.mxu0 %vm1852_vm10, %v1830_v53 }
 0x1e4   : > { %1026 = vst.msk [vmem:[#allocation2 + $0x90] sm:$0xff] %vm1007_vm5, %v948_v29  ;;  %1354 = vrot.lane.b32.xlu0 %v2600_v63, %s2998_s9 }
 0x1e5   : > { %1545 = vrot.lane.b32.xlu1 %v2631_v52, %s2999_s21 }
 0x1e6   : > { %v1528_v30 = vpop.permute.xlu0 %1527 }
 0x1e7   : > { %v1719_v56 = vpop.permute.xlu1 %1718  ;;  %1607 = vst.msk [vmem:[#allocation2 + $0x88] sm:$0xff] %vm1589_vm8, %v1528_v30 }
 0x1e8   : > { %1799 = vst.msk [vmem:[#allocation2 + $0x80] sm:$0xff] %vm1782_vm9, %v1719_v56  ;;  %776 = vrot.lane.b32.xlu0 %v2600_v63, %s2995_s6 }
 0x1e9   : > { %967 = vrot.lane.b32.xlu1 %v2631_v52, %s2996_s7 }
 0x1ea   : > { %v950_v22 = vpop.permute.xlu0 %949 }
 0x1eb   : > { %v1141_v44 = vpop.permute.xlu1 %1140  ;;  %1027 = vst.msk [vmem:[#allocation2 + $0x98] sm:$0xff] %vm1007_vm5, %v950_v22 }
 0x1ec   : > { %1219 = vst.msk [vmem:[#allocation2 + $0x90] sm:$0xff] %vm1200_vm6, %v1141_v44  ;;  %1547 = vrot.lane.b32.xlu0 %v2632_v34, %s2999_s21 }
 0x1ed   : > { %1738 = vrot.lane.b32.xlu1 %v2663_v35, %s3000_s29 }
 0x1ee   : > { %v1721_v23 = vpop.permute.xlu0 %1720 }
 0x1ef   : > { %v1143_v6 = vpop.permute.xlu1 %1142  ;;  %v1831_v57 = vld [vmem:[#allocation2 + $0x80] sm:$0xff]  ;;  %1800 = vst.msk [vmem:[#allocation2 + $0x88] sm:$0xff] %vm1782_vm9, %v1721_v23 }
 0x1f0   : > { %1220 = vst.msk [vmem:[#allocation2 + $0x98] sm:$0xff] %vm1200_vm6, %v1143_v6  ;;  %2781 = vmatprep.mubr.msk.f32.mxu1 %vm1852_vm10, %v1831_v57  ;;  %969 = vrot.lane.b32.xlu0 %v2632_v34, %s2996_s7 }
 0x1f1   : > { %1160 = vrot.lane.b32.xlu1 %v2663_v35, %s2997_s8 }
 0x1f2   : > { %v1337_v2 = vpop.permute.xlu0 %1336 }
 0x1f3   : > { %v759_v7 = vpop.permute.xlu1 %758  ;;  %1415 = vst.msk [vmem:[#allocation2 + $0x90] sm:$0xff] %vm1396_vm7, %v1337_v2 }
 0x1f4   : > { %835 = vst.msk [vmem:[#allocation2 + $0xa0] sm:$0xff] %vm814_vm4, %v759_v7  ;;  %1740 = vrot.lane.b32.xlu0 %v2664_v0, %s3000_s29 }
 0x1f5   : > { %1162 = vrot.lane.b32.xlu1 %v2664_v0, %s2997_s8 }
 0x1f6   : > { %v1339_v54 = vpop.permute.xlu0 %1338  ;;  %v1832_v42 = vld [vmem:[#allocation2 + $0x88] sm:$0xff] }
 0x1f7   : > { %v1530_v55 = vpop.permute.xlu1 %1529  ;;  %1416 = vst.msk [vmem:[#allocation2 + $0x98] sm:$0xff] %vm1396_vm7, %v1339_v54  ;;  %2782 = vmatmul.mubr.msk.f32.vlgmr.msra.gmra.mxu1 %vm1852_vm10, %v1832_v42 }
 0x1f8   : > { %1608 = vst.msk [vmem:[#allocation2 + $0x90] sm:$0xff] %vm1589_vm8, %v1530_v55  ;;  %1356 = vrot.lane.b32.xlu0 %v2601_v45, %s2998_s9 }
 0x1f9   : > { %778 = vrot.lane.b32.xlu1 %v2601_v45, %s2995_s6 }
 0x1fa   : > { %v761_v24 = vpop.permute.xlu0 %760 }
 0x1fb   : > { %v952_v25 = vpop.permute.xlu1 %951  ;;  %836 = vst.msk [vmem:[#allocation2 + $0xa8] sm:$0xff] %vm814_vm4, %v761_v24 }
 0x1fc   : > { %1028 = vst.msk [vmem:[#allocation2 + $0xa0] sm:$0xff] %vm1007_vm5, %v952_v25  ;;  %1358 = vrot.lane.b32.xlu0 %v2602_v43, %s2998_s9 }
 0x1fd   : > { %1549 = vrot.lane.b32.xlu1 %v2633_v1, %s2999_s21 }
 0x1fe   : > { %v1532_v36 = vpop.permute.xlu0 %1531 }
 0x1ff   : > { %v1723_v37 = vpop.permute.xlu1 %1722  ;;  %1609 = vst.msk [vmem:[#allocation2 + $0x98] sm:$0xff] %vm1589_vm8, %v1532_v36 }
 0x200   : > { %1801 = vst.msk [vmem:[#allocation2 + $0x90] sm:$0xff] %vm1782_vm9, %v1723_v37  ;;  %780 = vrot.lane.b32.xlu0 %v2602_v43, %s2995_s6  ;;  %s4002_s6 = sand.u32 1, %s2975_s13  }
 0x201   : > { %971 = vrot.lane.b32.xlu1 %v2633_v1, %s2996_s7 }
 0x202   : > { %v954_v12 = vpop.permute.xlu0 %953 }
 0x203   : > { %v1145_v16 = vpop.permute.xlu1 %1144  ;;  %1029 = vst.msk [vmem:[#allocation2 + $0xa8] sm:$0xff] %vm1007_vm5, %v954_v12 }
 0x204   : > { %1221 = vst.msk [vmem:[#allocation2 + $0xa0] sm:$0xff] %vm1200_vm6, %v1145_v16  ;;  %1551 = vrot.lane.b32.xlu0 %v2634_v8, %s2999_s21 }
 0x205   : > { %1742 = vrot.lane.b32.xlu1 %v2665_v3, %s3000_s29 }
 0x206   : > { %v1725_v9 = vpop.permute.xlu0 %1724 }
 0x207   : > { %v1147_v46 = vpop.permute.xlu1 %1146  ;;  %v1833_v47 = vld [vmem:[#allocation2 + $0x90] sm:$0xff]  ;;  %1802 = vst.msk [vmem:[#allocation2 + $0x98] sm:$0xff] %vm1782_vm9, %v1725_v9 }
 0x208   : > { %1222 = vst.msk [vmem:[#allocation2 + $0xa8] sm:$0xff] %vm1200_vm6, %v1147_v46  ;;  %2784 = vmatprep.mubr.msk.f32.mxu1 %vm1852_vm10, %v1833_v47  ;;  %973 = vrot.lane.b32.xlu0 %v2634_v8, %s2996_s7  ;;  %s2474_s7 = sshll.u32 %s4002_s6, 8 }
 0x209   : > { %1164 = vrot.lane.b32.xlu1 %v2665_v3, %s2997_s8 }
 0x20a   : > { %v1341_v26 = vpop.permute.xlu0 %1340 }
 0x20b   : > { %v763_v27 = vpop.permute.xlu1 %762  ;;  %1417 = vst.msk [vmem:[#allocation2 + $0xa0] sm:$0xff] %vm1396_vm7, %v1341_v26 }
 0x20c   : > { %837 = vst.msk [vmem:[#allocation2 + $0xb0] sm:$0xff] %vm814_vm4, %v763_v27  ;;  %1744 = vrot.lane.b32.xlu0 %v2666_v19, %s3000_s29 }
 0x20d   : > { %1166 = vrot.lane.b32.xlu1 %v2666_v19, %s2997_s8  ;;  %s4017_s8 = scalar_lea.vmem [#allocation3], %s2474_s7 }
 0x20e   : > { %v1343_v58 = vpop.permute.xlu0 %1342  ;;  %v1834_v38 = vld [vmem:[#allocation2 + $0x98] sm:$0xff] }
 0x20f   : > { %v1534_v59 = vpop.permute.xlu1 %1533  ;;  %1418 = vst.msk [vmem:[#allocation2 + $0xa8] sm:$0xff] %vm1396_vm7, %v1343_v58  ;;  %2785 = vmatmul.mubr.msk.f32.gmra.mxu1 %vm1852_vm10, %v1834_v38 }
 0x210   : > { %1610 = vst.msk [vmem:[#allocation2 + $0xa0] sm:$0xff] %vm1589_vm8, %v1534_v59  ;;  %1360 = vrot.lane.b32.xlu0 %v2603_v10, %s2998_s9 }
 0x211   : > { %1362 = vrot.lane.b32.xlu1 %v2604_v20, %s2998_s9  ;;  %s2339_s9 = sshll.u32 %s4017_s8, 4  ;;  %s4129_s9 = int_to_ptr.vmem [resolvable:$true] %s2339_s9 }
 0x212   : > { %v765_v48 = vpop.permute.xlu0 %764  ;;  %s2885_s23 = scalar_lea.vmem %s4129_s9, 4096  ;;  %p2892_p1 = scmp.lt.s32.totalorder %s4129_s9, %s2890_s27 }
 0x213   : > { %v956_v49 = vpop.permute.xlu1 %955  ;;  %838 = vst.msk [vmem:[#allocation2 + $0xb8] sm:$0xff] %vm814_vm4, %v765_v48  ;;  %p2886_p12 = scmp.ne.s32.totalorder %s4129_s9, %s2885_s23  ;;  %p2893_p2 = scmp.lt.s32.totalorder %s2891_s28, %s2885_s23 }
 0x214   : > { %1030 = vst.msk [vmem:[#allocation2 + $0xb0] sm:$0xff] %vm1007_vm5, %v956_v49  ;;  %1553 = vrot.lane.b32.xlu0 %v2635_v39, %s2999_s21 }
 0x215   : > { %1555 = vrot.lane.b32.xlu1 %v2636_v11, %s2999_s21  ;;  %s2319_s21 = scalar_lea.sflag [#allocation4], %s4002_s6  ;;  %p2887_p13 = pnand %p2886_p12, %p3064_p4 }
 0x216   : > { %v1536_v31 = vpop.permute.xlu0 %1535  ;;  %p2894_p3 = por %p2893_p2, %p2892_p1 }
 0x217   : > { %v1727_v14 = vpop.permute.xlu1 %1726  ;;  %1611 = vst.msk [vmem:[#allocation2 + $0xa8] sm:$0xff] %vm1589_vm8, %v1536_v31  ;;  %v2759_v60 = vpop.f32.mrf.mxu0  ;;  %p2888_p0 = pneg %p2887_p13 }
 0x218   : > { %1803 = vst.msk [vmem:[#allocation2 + $0xa0] sm:$0xff] %vm1782_vm9, %v1727_v14  ;;  %2179 = vst [vmem:[%s4017_s8 + $0x8] sm:$0xff] %v2759_v60  ;;  %1746 = vrot.lane.b32.xlu0 %v2667_v4, %s3000_s29  ;;  %v2249_v13 = vmul.f32 %v2759_v60, %v2759_v60 }
 0x219   : > { %1748 = vrot.lane.b32.xlu1 %v2668_v28, %s3000_s29  ;;  %v2019_v61 = vpop.f32.mrf.mxu0  ;;  %p2895_p5 = pnand %p2894_p3, %p2888_p0 }
 0x21a   : > { %2178 = vst [vmem:[%s4017_s8] sm:$0xff] %v2019_v61  ;;  %v2210_v15 = vadd.f32 %v2759_v60, %v2019_v61  ;;  %v2248_v50 = vmul.f32 %v2019_v61, %v2019_v61  ;;  %v958_v40 = vpop.permute.xlu0 %957 }
 0x21b   : > { %v1149_v51 = vpop.permute.xlu1 %1148  ;;  %1031 = vst.msk [vmem:[#allocation2 + $0xb8] sm:$0xff] %vm1007_vm5, %v958_v40 }
 0x21c   : > { %1223 = vst.msk [vmem:[#allocation2 + $0xb0] sm:$0xff] %vm1200_vm6, %v1149_v51  ;;  %v2280_v17 = vadd.f32 %v2249_v13, %v2248_v50 }
 0x21e   : > { %v1729_v32 = vpop.permute.xlu0 %1728 }
 0x21f   : > { %v1151_v33 = vpop.permute.xlu1 %1150  ;;  %v1835_v18 = vld [vmem:[#allocation2 + $0xa0] sm:$0xff]  ;;  %1804 = vst.msk [vmem:[#allocation2 + $0xa8] sm:$0xff] %vm1782_vm9, %v1729_v32 }
 0x220   : > { %1224 = vst.msk [vmem:[#allocation2 + $0xb8] sm:$0xff] %vm1200_vm6, %v1151_v33  ;;  %2787 = vmatprep.mubr.msk.f32.mxu1 %vm1852_vm10, %v1835_v18 }
 0x222   : > { %v1345_v41 = vpop.permute.xlu0 %1344 }
 0x223   : > { %v767_v62 = vpop.permute.xlu1 %766  ;;  %1419 = vst.msk [vmem:[#allocation2 + $0xb0] sm:$0xff] %vm1396_vm7, %v1345_v41 }
 0x224   : > { %839 = vst.msk [vmem:[#allocation2 + $0xc0] sm:$0xff] %vm814_vm4, %v767_v62 }
 0x226   : > { %v1347_v21 = vpop.permute.xlu0 %1346  ;;  %v1836_v52 = vld [vmem:[#allocation2 + $0xa8] sm:$0xff] }
 0x227   : > { %v1538_v63 = vpop.permute.xlu1 %1537  ;;  %1420 = vst.msk [vmem:[#allocation2 + $0xb8] sm:$0xff] %vm1396_vm7, %v1347_v21  ;;  %2788 = vmatmul.mubr.msk.f32.gmra.mxu1 %vm1852_vm10, %v1836_v52 }
 0x228   : > { %1612 = vst.msk [vmem:[#allocation2 + $0xb0] sm:$0xff] %vm1589_vm8, %v1538_v63 }
 0x22a   : > { %v769_v5 = vpop.permute.xlu0 %768 }
 0x22b   : > { %v960_v29 = vpop.permute.xlu1 %959  ;;  %840 = vst.msk [vmem:[#allocation2 + $0xc8] sm:$0xff] %vm814_vm4, %v769_v5  ;;  %v2762_v53 = vpop.f32.mrf.mxu0 }
 0x22c   : > { %1032 = vst.msk [vmem:[#allocation2 + $0xc0] sm:$0xff] %vm1007_vm5, %v960_v29  ;;  %2181 = vst [vmem:[%s4017_s8 + $0x18] sm:$0xff] %v2762_v53  ;;  %v2251_v44 = vmul.f32 %v2762_v53, %v2762_v53 }
 0x22d   : > { %v2029_v30 = vpop.f32.mrf.mxu0 }
 0x22e   : > { %2180 = vst [vmem:[%s4017_s8 + $0x10] sm:$0xff] %v2029_v30  ;;  %v2211_v56 = vadd.f32 %v2210_v15, %v2029_v30  ;;  %v2250_v34 = vmul.f32 %v2029_v30, %v2029_v30  ;;  %v1540_v35 = vpop.permute.xlu0 %1539 }
 0x22f   : > { %v1731_v22 = vpop.permute.xlu1 %1730  ;;  %1613 = vst.msk [vmem:[#allocation2 + $0xb8] sm:$0xff] %vm1589_vm8, %v1540_v35 }
 0x230   : > { %1805 = vst.msk [vmem:[#allocation2 + $0xb0] sm:$0xff] %vm1782_vm9, %v1731_v22  ;;  %v2281_v23 = vadd.f32 %v2280_v17, %v2250_v34  ;;  %v2212_v6 = vadd.f32 %v2762_v53, %v2211_v56 }
 0x232   : > { %v962_v57 = vpop.permute.xlu0 %961  ;;  %v2282_v2 = vadd.f32 %v2281_v23, %v2251_v44 }
 0x233   : > { %v1153_v0 = vpop.permute.xlu1 %1152  ;;  %1033 = vst.msk [vmem:[#allocation2 + $0xc8] sm:$0xff] %vm1007_vm5, %v962_v57 }
 0x234   : > { %1225 = vst.msk [vmem:[#allocation2 + $0xc0] sm:$0xff] %vm1200_vm6, %v1153_v0 }
 0x236   : > { %v1733_v7 = vpop.permute.xlu0 %1732 }
 0x237   : > { %v1155_v45 = vpop.permute.xlu1 %1154  ;;  %v1837_v54 = vld [vmem:[#allocation2 + $0xb0] sm:$0xff]  ;;  %1806 = vst.msk [vmem:[#allocation2 + $0xb8] sm:$0xff] %vm1782_vm9, %v1733_v7 }
 0x238   : > { %1226 = vst.msk [vmem:[#allocation2 + $0xc8] sm:$0xff] %vm1200_vm6, %v1155_v45  ;;  %2790 = vmatprep.mubr.msk.f32.mxu1 %vm1852_vm10, %v1837_v54 }
 0x23a   : > { %v1349_v55 = vpop.permute.xlu0 %1348 }
 0x23b   : > { %v771_v42 = vpop.permute.xlu1 %770  ;;  %1421 = vst.msk [vmem:[#allocation2 + $0xc0] sm:$0xff] %vm1396_vm7, %v1349_v55 }
 0x23c   : > { %841 = vst.msk [vmem:[#allocation2 + $0xd0] sm:$0xff] %vm814_vm4, %v771_v42 }
 0x23e   : > { %v1351_v43 = vpop.permute.xlu0 %1350  ;;  %v1838_v24 = vld [vmem:[#allocation2 + $0xb8] sm:$0xff] }
 0x23f   : > { %v1542_v1 = vpop.permute.xlu1 %1541  ;;  %1422 = vst.msk [vmem:[#allocation2 + $0xc8] sm:$0xff] %vm1396_vm7, %v1351_v43  ;;  %v2765_v25 = vpop.f32.mrf.mxu0  ;;  %2791 = vmatmul.mubr.msk.f32.gmra.mxu1 %vm1852_vm10, %v1838_v24 }
 0x240   : > { %1614 = vst.msk [vmem:[#allocation2 + $0xc0] sm:$0xff] %vm1589_vm8, %v1542_v1  ;;  %2183 = vst [vmem:[%s4017_s8 + $0x28] sm:$0xff] %v2765_v25  ;;  %v2253_v16 = vmul.f32 %v2765_v25, %v2765_v25 }
 0x241   : > { %v2039_v36 = vpop.f32.mrf.mxu0 }
 0x242   : > { %2182 = vst [vmem:[%s4017_s8 + $0x20] sm:$0xff] %v2039_v36  ;;  %v2213_v37 = vadd.f32 %v2212_v6, %v2039_v36  ;;  %v2252_v8 = vmul.f32 %v2039_v36, %v2039_v36  ;;  %v773_v3 = vpop.permute.xlu0 %772 }
 0x243   : > { %v964_v12 = vpop.permute.xlu1 %963  ;;  %842 = vst.msk [vmem:[#allocation2 + $0xd8] sm:$0xff] %vm814_vm4, %v773_v3 }
 0x244   : > { %1034 = vst.msk [vmem:[#allocation2 + $0xd0] sm:$0xff] %vm1007_vm5, %v964_v12  ;;  %v2283_v9 = vadd.f32 %v2282_v2, %v2252_v8  ;;  %v2214_v46 = vadd.f32 %v2765_v25, %v2213_v37 }
 0x246   : > { %v1544_v47 = vpop.permute.xlu0 %1543  ;;  %v2284_v26 = vadd.f32 %v2283_v9, %v2253_v16 }
 0x247   : > { %v1735_v19 = vpop.permute.xlu1 %1734  ;;  %1615 = vst.msk [vmem:[#allocation2 + $0xc8] sm:$0xff] %vm1589_vm8, %v1544_v47 }
 0x248   : > { %1807 = vst.msk [vmem:[#allocation2 + $0xc0] sm:$0xff] %vm1782_vm9, %v1735_v19 }
 0x24a   : > { %v966_v27 = vpop.permute.xlu0 %965 }
 0x24b   : > { %v1157_v10 = vpop.permute.xlu1 %1156  ;;  %1035 = vst.msk [vmem:[#allocation2 + $0xd8] sm:$0xff] %vm1007_vm5, %v966_v27 }
 0x24c   : > { %1227 = vst.msk [vmem:[#allocation2 + $0xd0] sm:$0xff] %vm1200_vm6, %v1157_v10 }
 0x24e   : > { %v1737_v20 = vpop.permute.xlu0 %1736 }
 0x24f   : > { %v1159_v58 = vpop.permute.xlu1 %1158  ;;  %v1839_v59 = vld [vmem:[#allocation2 + $0xc0] sm:$0xff]  ;;  %1808 = vst.msk [vmem:[#allocation2 + $0xc8] sm:$0xff] %vm1782_vm9, %v1737_v20 }
 0x250   : > { %1228 = vst.msk [vmem:[#allocation2 + $0xd8] sm:$0xff] %vm1200_vm6, %v1159_v58  ;;  %2793 = vmatprep.mubr.msk.f32.mxu1 %vm1852_vm10, %v1839_v59 }
 0x252   : > { %v1353_v38 = vpop.permute.xlu0 %1352 }
 0x253   : > { %v775_v39 = vpop.permute.xlu1 %774  ;;  %1423 = vst.msk [vmem:[#allocation2 + $0xd0] sm:$0xff] %vm1396_vm7, %v1353_v38  ;;  %v2768_v11 = vpop.f32.mrf.mxu0 }
 0x254   : > { %843 = vst.msk [vmem:[#allocation2 + $0xe0] sm:$0xff] %vm814_vm4, %v775_v39  ;;  %2185 = vst [vmem:[%s4017_s8 + $0x38] sm:$0xff] %v2768_v11  ;;  %v2255_v60 = vmul.f32 %v2768_v11, %v2768_v11 }
 0x255   : > { %v2049_v48 = vpop.f32.mrf.mxu0 }
 0x256   : > { %2184 = vst [vmem:[%s4017_s8 + $0x30] sm:$0xff] %v2049_v48  ;;  %v2215_v49 = vadd.f32 %v2214_v46, %v2049_v48  ;;  %v2254_v4 = vmul.f32 %v2049_v48, %v2049_v48  ;;  %v1355_v28 = vpop.permute.xlu0 %1354  ;;  %v1840_v14 = vld [vmem:[#allocation2 + $0xc8] sm:$0xff] }
 0x257   : > { %v1546_v31 = vpop.permute.xlu1 %1545  ;;  %1424 = vst.msk [vmem:[#allocation2 + $0xd8] sm:$0xff] %vm1396_vm7, %v1355_v28  ;;  %2794 = vmatmul.mubr.msk.f32.gmra.mxu1 %vm1852_vm10, %v1840_v14 }
 0x258   : > { %1616 = vst.msk [vmem:[#allocation2 + $0xd0] sm:$0xff] %vm1589_vm8, %v1546_v31  ;;  %v2285_v61 = vadd.f32 %v2284_v26, %v2254_v4  ;;  %v2216_v13 = vadd.f32 %v2768_v11, %v2215_v49 }
 0x25a   : > { %v777_v15 = vpop.permute.xlu0 %776  ;;  %v2286_v40 = vadd.f32 %v2285_v61, %v2255_v60 }
 0x25b   : > { %v968_v50 = vpop.permute.xlu1 %967  ;;  %844 = vst.msk [vmem:[#allocation2 + $0xe8] sm:$0xff] %vm814_vm4, %v777_v15 }
 0x25c   : > { %1036 = vst.msk [vmem:[#allocation2 + $0xe0] sm:$0xff] %vm1007_vm5, %v968_v50 }
 0x25e   : > { %v1548_v51 = vpop.permute.xlu0 %1547 }
 0x25f   : > { %v1739_v17 = vpop.permute.xlu1 %1738  ;;  %1617 = vst.msk [vmem:[#allocation2 + $0xd8] sm:$0xff] %vm1589_vm8, %v1548_v51 }
 0x260   : > { %1809 = vst.msk [vmem:[#allocation2 + $0xd0] sm:$0xff] %vm1782_vm9, %v1739_v17 }
 0x262   : > { %v970_v32 = vpop.permute.xlu0 %969 }
 0x263   : > { %v1161_v33 = vpop.permute.xlu1 %1160  ;;  %1037 = vst.msk [vmem:[#allocation2 + $0xe8] sm:$0xff] %vm1007_vm5, %v970_v32 }
 0x264   : > { %1229 = vst.msk [vmem:[#allocation2 + $0xe0] sm:$0xff] %vm1200_vm6, %v1161_v33 }
 0x266   : > { %v1741_v18 = vpop.permute.xlu0 %1740 }
 0x267   : > { %v1163_v41 = vpop.permute.xlu1 %1162  ;;  %v1841_v62 = vld [vmem:[#allocation2 + $0xd0] sm:$0xff]  ;;  %1810 = vst.msk [vmem:[#allocation2 + $0xd8] sm:$0xff] %vm1782_vm9, %v1741_v18  ;;  %v2771_v21 = vpop.f32.mrf.mxu0 }
 0x268   : > { %1230 = vst.msk [vmem:[#allocation2 + $0xe8] sm:$0xff] %vm1200_vm6, %v1163_v41  ;;  %2796 = vmatprep.mubr.msk.f32.mxu1 %vm1852_vm10, %v1841_v62  ;;  %2187 = vst [vmem:[%s4017_s8 + $0x48] sm:$0xff] %v2771_v21  ;;  %v2257_v30 = vmul.f32 %v2771_v21, %v2771_v21 }
 0x269   : > { %v2059_v63 = vpop.f32.mrf.mxu0 }
 0x26a   : > { %2186 = vst [vmem:[%s4017_s8 + $0x40] sm:$0xff] %v2059_v63  ;;  %v2217_v52 = vadd.f32 %v2216_v13, %v2059_v63  ;;  %v2256_v5 = vmul.f32 %v2059_v63, %v2059_v63  ;;  %v1357_v29 = vpop.permute.xlu0 %1356 }
 0x26b   : > { %v779_v53 = vpop.permute.xlu1 %778  ;;  %1425 = vst.msk [vmem:[#allocation2 + $0xe0] sm:$0xff] %vm1396_vm7, %v1357_v29 }
 0x26c   : > { %845 = vst.msk [vmem:[#allocation2 + $0xf0] sm:$0xff] %vm814_vm4, %v779_v53  ;;  %v2287_v56 = vadd.f32 %v2286_v40, %v2256_v5  ;;  %v2218_v34 = vadd.f32 %v2771_v21, %v2217_v52 }
 0x26e   : > { %v1359_v35 = vpop.permute.xlu0 %1358  ;;  %v1842_v44 = vld [vmem:[#allocation2 + $0xd8] sm:$0xff]  ;;  %v2288_v23 = vadd.f32 %v2287_v56, %v2257_v30 }
 0x26f   : > { %v1550_v22 = vpop.permute.xlu1 %1549  ;;  %1426 = vst.msk [vmem:[#allocation2 + $0xe8] sm:$0xff] %vm1396_vm7, %v1359_v35  ;;  %2797 = vmatmul.mubr.msk.f32.gmra.mxu1 %vm1852_vm10, %v1842_v44 }
 0x270   : > { %1618 = vst.msk [vmem:[#allocation2 + $0xe0] sm:$0xff] %vm1589_vm8, %v1550_v22 }
 0x272   : > { %v781_v6 = vpop.permute.xlu0 %780 }
 0x273   : > { %v972_v57 = vpop.permute.xlu1 %971  ;;  %846 = vst.msk [vmem:[#allocation2 + $0xf8] sm:$0xff] %vm814_vm4, %v781_v6 }
 0x274   : > { %1038 = vst.msk [vmem:[#allocation2 + $0xf0] sm:$0xff] %vm1007_vm5, %v972_v57 }
 0x276   : > { %v1552_v0 = vpop.permute.xlu0 %1551 }
 0x277   : > { %v1743_v2 = vpop.permute.xlu1 %1742  ;;  %1619 = vst.msk [vmem:[#allocation2 + $0xe8] sm:$0xff] %vm1589_vm8, %v1552_v0 }
 0x278   : > { %1811 = vst.msk [vmem:[#allocation2 + $0xe0] sm:$0xff] %vm1782_vm9, %v1743_v2 }
 0x27a   : > { %v974_v7 = vpop.permute.xlu0 %973 }
 0x27b   : > { %v1165_v45 = vpop.permute.xlu1 %1164  ;;  %1039 = vst.msk [vmem:[#allocation2 + $0xf8] sm:$0xff] %vm1007_vm5, %v974_v7  ;;  %v2774_v54 = vpop.f32.mrf.mxu0 }
 0x27c   : > { %1231 = vst.msk [vmem:[#allocation2 + $0xf0] sm:$0xff] %vm1200_vm6, %v1165_v45  ;;  %2189 = vst [vmem:[%s4017_s8 + $0x58] sm:$0xff] %v2774_v54  ;;  %v2259_v36 = vmul.f32 %v2774_v54, %v2774_v54 }
 0x27d   : > { %v2069_v55 = vpop.f32.mrf.mxu0 }
 0x27e   : > { %2188 = vst [vmem:[%s4017_s8 + $0x50] sm:$0xff] %v2069_v55  ;;  %v2219_v42 = vadd.f32 %v2218_v34, %v2069_v55  ;;  %v2258_v43 = vmul.f32 %v2069_v55, %v2069_v55  ;;  %v1745_v1 = vpop.permute.xlu0 %1744 }
 0x27f   : > { %v1167_v24 = vpop.permute.xlu1 %1166  ;;  %v1843_v25 = vld [vmem:[#allocation2 + $0xe0] sm:$0xff]  ;;  %1812 = vst.msk [vmem:[#allocation2 + $0xe8] sm:$0xff] %vm1782_vm9, %v1745_v1 }
 0x280   : > { %1232 = vst.msk [vmem:[#allocation2 + $0xf8] sm:$0xff] %vm1200_vm6, %v1167_v24  ;;  %2799 = vmatprep.mubr.msk.f32.mxu1 %vm1852_vm10, %v1843_v25  ;;  %v2289_v37 = vadd.f32 %v2288_v23, %v2258_v43  ;;  %v2220_v8 = vadd.f32 %v2774_v54, %v2219_v42 }
 0x282   : > { %v1361_v3 = vpop.permute.xlu0 %1360  ;;  %v2290_v16 = vadd.f32 %v2289_v37, %v2259_v36 }
 0x283   : > { %v1363_v12 = vpop.permute.xlu1 %1362  ;;  %1427 = vst.msk [vmem:[#allocation2 + $0xf0] sm:$0xff] %vm1396_vm7, %v1361_v3 }
 0x284   : > { %1428 = vst.msk [vmem:[#allocation2 + $0xf8] sm:$0xff] %vm1396_vm7, %v1363_v12 }
 0x286   : > { %v1554_v9 = vpop.permute.xlu0 %1553  ;;  %v1844_v47 = vld [vmem:[#allocation2 + $0xe8] sm:$0xff] }
 0x287   : > { %v1556_v46 = vpop.permute.xlu1 %1555  ;;  %1620 = vst.msk [vmem:[#allocation2 + $0xf0] sm:$0xff] %vm1589_vm8, %v1554_v9  ;;  %2800 = vmatmul.mubr.msk.f32.gmra.mxu1 %vm1852_vm10, %v1844_v47 }
 0x288   : > { %1621 = vst.msk [vmem:[#allocation2 + $0xf8] sm:$0xff] %vm1589_vm8, %v1556_v46 }
 0x28a   : > { %v1747_v19 = vpop.permute.xlu0 %1746 }
 0x28b   : > { %v1749_v26 = vpop.permute.xlu1 %1748  ;;  %1813 = vst.msk [vmem:[#allocation2 + $0xf0] sm:$0xff] %vm1782_vm9, %v1747_v19 }
 0x28c   : > { %1814 = vst.msk [vmem:[#allocation2 + $0xf8] sm:$0xff] %vm1782_vm9, %v1749_v26 }
 0x28f   : > { %v2777_v27 = vpop.f32.mrf.mxu0 }
 0x290   : > { %2191 = vst [vmem:[%s4017_s8 + $0x68] sm:$0xff] %v2777_v27  ;;  %v2261_v39 = vmul.f32 %v2777_v27, %v2777_v27 }
 0x291   : > { %v2079_v10 = vpop.f32.mrf.mxu0 }
 0x292   : > { %2190 = vst [vmem:[%s4017_s8 + $0x60] sm:$0xff] %v2079_v10  ;;  %v2221_v20 = vadd.f32 %v2220_v8, %v2079_v10  ;;  %v2260_v58 = vmul.f32 %v2079_v10, %v2079_v10  ;;  %v1845_v59 = vld [vmem:[#allocation2 + $0xf0] sm:$0xff] }
 0x293   : > { %v1846_v38 = vld [vmem:[#allocation2 + $0xf8] sm:$0xff]  ;;  %2802 = vmatprep.mubr.msk.f32.mxu1 %vm1852_vm10, %v1845_v59 }
 0x294   : > { %v2291_v11 = vadd.f32 %v2290_v16, %v2260_v58  ;;  %2803 = vmatmul.mubr.msk.f32.gmra.mxu1 %vm1852_vm10, %v1846_v38  ;;  %v2222_v48 = vadd.f32 %v2777_v27, %v2221_v20 }
 0x296   : > { %v2292_v49 = vadd.f32 %v2291_v11, %v2261_v39 }
 0x2a3   : > { %v2780_v4 = vpop.f32.mrf.mxu0 }
 0x2a4   : > { %2193 = vst [vmem:[%s4017_s8 + $0x78] sm:$0xff] %v2780_v4  ;;  %v2263_v60 = vmul.f32 %v2780_v4, %v2780_v4 }
 0x2a5   : > { %v2089_v28 = vpop.f32.mrf.mxu0 }
 0x2a6   : > { %2192 = vst [vmem:[%s4017_s8 + $0x70] sm:$0xff] %v2089_v28  ;;  %v2223_v31 = vadd.f32 %v2222_v48, %v2089_v28  ;;  %v2262_v14 = vmul.f32 %v2089_v28, %v2089_v28 }
 0x2a8   : > { %v2224_v61 = vadd.f32 %v2780_v4, %v2223_v31  ;;  %v2293_v13 = vadd.f32 %v2292_v49, %v2262_v14 }
 0x2aa   : > { %v2294_v15 = vadd.f32 %v2293_v13, %v2263_v60 }
 0x2b7   : > { %v2783_v50 = vpop.f32.mrf.mxu1 }
 0x2b8   : > { %2195 = vst [vmem:[%s4017_s8 + $0x88] sm:$0xff] %v2783_v50  ;;  %v2265_v32 = vmul.f32 %v2783_v50, %v2783_v50 }
 0x2b9   : > { %v2099_v40 = vpop.f32.mrf.mxu1 }
 0x2ba   : > { %2194 = vst [vmem:[%s4017_s8 + $0x80] sm:$0xff] %v2099_v40  ;;  %v2225_v51 = vadd.f32 %v2224_v61, %v2099_v40  ;;  %v2264_v17 = vmul.f32 %v2099_v40, %v2099_v40 }
 0x2bc   : > { %v2295_v33 = vadd.f32 %v2294_v15, %v2264_v17  ;;  %v2226_v18 = vadd.f32 %v2783_v50, %v2225_v51 }
 0x2be   : > { %v2296_v41 = vadd.f32 %v2295_v33, %v2265_v32 }
 0x2cf   : > { %v2786_v62 = vpop.f32.mrf.mxu1 }
 0x2d0   : > { %2197 = vst [vmem:[%s4017_s8 + $0x98] sm:$0xff] %v2786_v62  ;;  %v2267_v5 = vmul.f32 %v2786_v62, %v2786_v62 }
 0x2d1   : > { %v2109_v21 = vpop.f32.mrf.mxu1 }
 0x2d2   : > { %2196 = vst [vmem:[%s4017_s8 + $0x90] sm:$0xff] %v2109_v21  ;;  %v2227_v63 = vadd.f32 %v2226_v18, %v2109_v21  ;;  %v2266_v52 = vmul.f32 %v2109_v21, %v2109_v21 }
 0x2d4   : > { %v2297_v29 = vadd.f32 %v2296_v41, %v2266_v52  ;;  %v2228_v53 = vadd.f32 %v2786_v62, %v2227_v63 }
 0x2d6   : > { %v2298_v30 = vadd.f32 %v2297_v29, %v2267_v5 }
 0x2e7   : > { %v2789_v56 = vpop.f32.mrf.mxu1 }
 0x2e8   : > { %2199 = vst [vmem:[%s4017_s8 + $0xa8] sm:$0xff] %v2789_v56  ;;  %v2269_v44 = vmul.f32 %v2789_v56, %v2789_v56 }
 0x2e9   : > { %v2119_v34 = vpop.f32.mrf.mxu1 }
 0x2ea   : > { %2198 = vst [vmem:[%s4017_s8 + $0xa0] sm:$0xff] %v2119_v34  ;;  %v2229_v35 = vadd.f32 %v2228_v53, %v2119_v34  ;;  %v2268_v22 = vmul.f32 %v2119_v34, %v2119_v34 }
 0x2ec   : > { %v2299_v23 = vadd.f32 %v2298_v30, %v2268_v22  ;;  %v2230_v6 = vadd.f32 %v2789_v56, %v2229_v35 }
 0x2ee   : > { %v2300_v57 = vadd.f32 %v2299_v23, %v2269_v44 }
 0x2ff   : > { %v2792_v0 = vpop.f32.mrf.mxu1 }
 0x300   : > { %2201 = vst [vmem:[%s4017_s8 + $0xb8] sm:$0xff] %v2792_v0  ;;  %v2271_v54 = vmul.f32 %v2792_v0, %v2792_v0 }
 0x301   : > { %v2129_v2 = vpop.f32.mrf.mxu1 }
 0x302   : > { %2200 = vst [vmem:[%s4017_s8 + $0xb0] sm:$0xff] %v2129_v2  ;;  %v2231_v7 = vadd.f32 %v2230_v6, %v2129_v2  ;;  %v2270_v45 = vmul.f32 %v2129_v2, %v2129_v2 }
 0x304   : > { %v2301_v55 = vadd.f32 %v2300_v57, %v2270_v45  ;;  %v2232_v42 = vadd.f32 %v2792_v0, %v2231_v7 }
 0x306   : > { %v2302_v43 = vadd.f32 %v2301_v55, %v2271_v54 }
 0x317   : > { %v2795_v1 = vpop.f32.mrf.mxu1 }
 0x318   : > { %2203 = vst [vmem:[%s4017_s8 + $0xc8] sm:$0xff] %v2795_v1  ;;  %v2273_v16 = vmul.f32 %v2795_v1, %v2795_v1 }
 0x319   : > { %v2139_v24 = vpop.f32.mrf.mxu1 }
 0x31a   : > { %2202 = vst [vmem:[%s4017_s8 + $0xc0] sm:$0xff] %v2139_v24  ;;  %v2272_v37 = vmul.f32 %v2139_v24, %v2139_v24  ;;  %v2233_v8 = vadd.f32 %v2232_v42, %v2139_v24 }
 0x31c   : > { %v2303_v3 = vadd.f32 %v2302_v43, %v2272_v37  ;;  %v2234_v9 = vadd.f32 %v2795_v1, %v2233_v8 }
 0x31e   : > { %v2304_v26 = vadd.f32 %v2303_v3, %v2273_v16 }
 0x32f   : > { %v2798_v25 = vpop.f32.mrf.mxu1 }
 0x330   : > { %2205 = vst [vmem:[%s4017_s8 + $0xd8] sm:$0xff] %v2798_v25  ;;  %v2275_v10 = vmul.f32 %v2798_v25, %v2798_v25 }
 0x331   : > { %v2149_v36 = vpop.f32.mrf.mxu1 }
 0x332   : > { %2204 = vst [vmem:[%s4017_s8 + $0xd0] sm:$0xff] %v2149_v36  ;;  %v2274_v46 = vmul.f32 %v2149_v36, %v2149_v36  ;;  %v2235_v19 = vadd.f32 %v2234_v9, %v2149_v36 }
 0x334   : > { %v2305_v27 = vadd.f32 %v2304_v26, %v2274_v46  ;;  %v2236_v20 = vadd.f32 %v2798_v25, %v2235_v19 }
 0x336   : > { %v2306_v38 = vadd.f32 %v2305_v27, %v2275_v10 }
 0x347   : > { %v2801_v12 = vpop.f32.mrf.mxu1 }
 0x348   : > { %2207 = vst [vmem:[%s4017_s8 + $0xe8] sm:$0xff] %v2801_v12  ;;  %v2277_v48 = vmul.f32 %v2801_v12, %v2801_v12 }
 0x349   : > { %v2159_v47 = vpop.f32.mrf.mxu1 }
 0x34a   : > { %2206 = vst [vmem:[%s4017_s8 + $0xe0] sm:$0xff] %v2159_v47  ;;  %v2276_v58 = vmul.f32 %v2159_v47, %v2159_v47  ;;  %v2237_v59 = vadd.f32 %v2236_v20, %v2159_v47 }
 0x34c   : > { %v2307_v39 = vadd.f32 %v2306_v38, %v2276_v58  ;;  %v2238_v49 = vadd.f32 %v2801_v12, %v2237_v59 }
 0x34e   : > { %v2308_v14 = vadd.f32 %v2307_v39, %v2277_v48 }
 0x354   : > { %v2804_v11 = vpop.f32.mrf.mxu1 }
 0x355   : > { %2209 = vst [vmem:[%s4017_s8 + $0xf8] sm:$0xff] %v2804_v11 }
 0x356   : > { %v2169_v4 = vpop.f32.mrf.mxu1 }
 0x357   : > { %2208 = vst [vmem:[%s4017_s8 + $0xf0] sm:$0xff] %v2169_v4  ;;  %v2239_v28 = vadd.f32 %v2238_v49, %v2169_v4  ;;  %v2278_v31 = vmul.f32 %v2169_v4, %v2169_v4 }
 0x358   : > { %2898 = shalt.err (!%p2895_p5)
}
 0x359   : > { %s2899_s29 = scalar_lea.hbm %s4126_s19, 4096  ;;  %s2903_s7 = scalar_lea.hbm %s4198_s2, 8192 }
 0x35a   : > { %p2900_p6 = scmp.ne.s32.totalorder %s4126_s19, %s2899_s29  ;;  %p2904_p10 = scmp.lt.s32.totalorder %s4126_s19, %s4198_s2 }
 0x35b   : > { %p2905_p11 = scmp.lt.s32.totalorder %s2903_s7, %s2899_s29 }
 0x35c   : > { %p2901_p7 = pnand %p2900_p6, %p3064_p4 }
 0x35d   : > { %p2906_p12 = por %p2905_p11, %p2904_p10 }
 0x35e   : > { %p2902_p9 = pneg %p2901_p7 }
 0x360   : > { %p2907_p13 = pnand %p2906_p12, %p2902_p9 }
 0x362   : > { %2910 = shalt.err (!%p2907_p13)
}
 0x363   : > { %s3002_s11 = smov 128   ;;  %v2279_v60 = vmul.f32 %v2804_v11, %v2804_v11  ;;  %v2240_v61 = vadd.f32 %v2804_v11, %v2239_v28  ;;  %v2309_v13 = vadd.f32 %v2308_v14, %v2278_v31  ;;  %s2475_s18 = sshll.u32 %s4002_s6, 1 }
 0x364   : > { %2816 = dma.vmem_to_hbm [thread:$0]  (%p3064_p4), %s4129_s9, 4096, %s4126_s19, %s2319_s21, %s3002_s11, %s3002_s11, %s2994_s5  }
 0x365   : > { %v2241_v15 = vrot.slane %v2240_v61, 4  ;;  %v2310_v50 = vadd.f32 %v2309_v13, %v2279_v60  ;;  %s2706_s23 = sshll.u32 %s2983_s15, 5  ;;  %s190_s26 = scalar_lea.vmem [#allocation5], %s2475_s18 }
 0x366   : > { %s2356_s27 = sshll.u32 %s190_s26, 4  ;;  %s2354_s19 = scalar_lea.hbm %s4199_s3, %s2706_s23  ;;  %s2357_s27 = int_to_ptr.vmem [resolvable:$true] %s2356_s27 }
 0x367   : > { %v2242_v40 = vadd.f32 %v2241_v15, %v2240_v61  ;;  %v2311_v51 = vrot.slane %v2310_v50, 4  ;;  %s2324_s21 = scalar_lea.sflag [#allocation6], %s4002_s6  ;;  %s2911_s28 = scalar_lea.vmem %s2357_s27, 32 }
 0x368   : > { %p2912_p0 = scmp.ne.s32.totalorder %s2357_s27, %s2911_s28  ;;  %s3003_s29 = smov [#allocation5]  }
 0x369   : > { %v2243_v17 = vrot.slane %v2242_v40, 2  ;;  %v2312_v32 = vadd.f32 %v2311_v51, %v2310_v50  ;;  %s2915_s15 = sshll.u32 %s3003_s29, 4  ;;  %s2916_s15 = int_to_ptr.vmem [resolvable:$false] %s2915_s15 }
 0x36a   : > { %p2913_p1 = pnand %p2912_p0, %p3064_p4  ;;  %s2917_s4 = scalar_lea.vmem %s2916_s15, 64 }
 0x36b   : > { %v2244_v33 = vadd.f32 %v2243_v17, %v2242_v40  ;;  %v2313_v18 = vrot.slane %v2312_v32, 2  ;;  %p2918_p3 = scmp.lt.s32.totalorder %s2357_s27, %s2916_s15  ;;  %p2919_p5 = scmp.lt.s32.totalorder %s2917_s4, %s2911_s28 }
 0x36c   : > { %p2914_p2 = pneg %p2913_p1 }
 0x36d   : > { %v2245_v41 = vrot.slane %v2244_v33, 1  ;;  %v2314_v62 = vadd.f32 %v2313_v18, %v2312_v32  ;;  %p2920_p6 = por %p2919_p5, %p2918_p3 }
 0x36f   : > { %v2246_v21 = vadd.f32 %v2245_v41, %v2244_v33  ;;  %v2315_v63 = vrot.slane %v2314_v62, 1  ;;  %p2921_p7 = pnand %p2920_p6, %p2914_p2 }
 0x371   : > { %2247 = vst [vmem:[%s190_s26] sm:$0x1] %v2246_v21  ;;  %v2316_v52 = vadd.f32 %v2315_v63, %v2314_v62 }
 0x373   : > { %2317 = vst [vmem:[%s190_s26 + $0x1] sm:$0x1] %v2316_v52 }
 0x374   : > { %2924 = shalt.err (!%p2921_p7)
}
 0x375   : > { %s2925_s10 = scalar_lea.hbm %s2354_s19, 32  ;;  %s2929_s8 = scalar_lea.hbm %s4199_s3, 64 }
 0x376   : > { %p2926_p9 = scmp.ne.s32.totalorder %s2354_s19, %s2925_s10  ;;  %p2930_p12 = scmp.lt.s32.totalorder %s2354_s19, %s4199_s3 }
 0x377   : > { %p2931_p13 = scmp.lt.s32.totalorder %s2929_s8, %s2925_s10 }
 0x378   : > { %p2927_p10 = pnand %p2926_p9, %p3064_p4 }
 0x379   : > { %p2932_p0 = por %p2931_p13, %p2930_p12 }
 0x37a   : > { %p2928_p11 = pneg %p2927_p10 }
 0x37c   : > { %p2933_p1 = pnand %p2932_p0, %p2928_p11 }
 0x37e   : > { %2936 = shalt.err (!%p2933_p1)
}
 0x37f   : > { %2817 = dma.vmem_to_hbm [thread:$0]  (%p3064_p4), %s2357_s27, 32, %s2354_s19, %s2324_s21  }
 0x380 PF: > { %p2827_p2 = scmp.ge.s32.totalorder %s2991_s17, 2  ;;  %s2368_s18 = sand.u32 1, %s2971_s12  }
 0x381   : > { %s2369_s23 = scalar_lea.sflag [#allocation4], %s2368_s18 }
 0x382   : > { %p2821_p3 = pnand %p2827_p2, %p3071_p8 }
 0x384   : > { %p2822_p5 = pneg %p2821_p3 }
 0x386   : > { %2962 = dma.done.wait (%p2822_p5), %s2369_s23, 4096  }
 0x387   : > { %2964 = vsyncadd (%p2822_p5), %s2369_s23, 4294963200  ;;  %s2378_s26 = scalar_lea.sflag [#allocation6], %s2368_s18 }
 0x388   : > { %2966 = dma.done.wait (%p2822_p5), %s2378_s26, 32  }
 0x389   : > { %2968 = vsyncadd (%p2822_p5), %s2378_s26, 4294967264  ;;  %s20_s17 = sadd.s32 1, %s2991_s17   ;;  %s4202_s12 = smov %s2975_s13 }
 0x38a   : > { %p17_p6 = scmp.ge.s32.totalorder %s20_s17, 4   ;;  %s4203_s13 = smov %s2979_s14 }
 0x38b   : > { %s4204_s14 = smov %s3077_s25  ;;  %s4205_s15 = smov %s2987_s16 }
 0x38c   : > { %s4206_s16 = smov %s4208_s20  ;;  %19 = sbr.rel (!%p17_p6) target bundleno = 6 (0x6), region = 83 }
 0x391   :  { %2383 = vsyncpa [#allocation4], 1 }
 0x392   :  { %2385 = vsyncpa [#allocation4 + $0x1], 1 }
 0x393   :  { %2386 = vsyncpa [#allocation6], 1 }
 0x394   :  { %2388 = vsyncpa [#allocation6 + $0x1], 1 }

</bundles_post_ra>
